<compile_context>
chip_gen: v6e
topology: v6e:2x2x1
jax: 0.10.0
libtpu: 0.0.40
codegen_flags: <defaults>
</compile_context>

<pallas_src>
import functools

import jax
import jax.numpy as jnp
from jax.experimental import pallas as pl
from jax.experimental.pallas import tpu as pltpu


def _round_up(n, m):
    return ((n + m - 1) // m) * m


def _has_bf16_valu():
    """v6e/v7x have a bf16 VPU; v5e and older do not -> keep the ReLU in f32 there."""
    try:
        kind = jax.devices()[0].device_kind.lower()
    except Exception:
        return True
    return not any(tag in kind for tag in ("v2", "v3", "v4", "v5"))


def _choose_batch_tiling(B):
    """Pick (TB, Bp): minimize batch padding, amortize per-step overhead, and give the grid
    >= 2 steps (v7x dual-TC) once the batch is big enough to split."""
    ALIGN, MAX_TB = 16, 2048
    n_steps = pl.cdiv(B, MAX_TB)
    if B > 2 * ALIGN:
        n_steps = max(n_steps, 2)
    tb = min(MAX_TB, _round_up(pl.cdiv(B, n_steps), ALIGN))
    bp = _round_up(B, tb)
    return tb, bp


def _vmem_bytes_estimate(TB, D, Hp, Cp):
    weights = 2 * (D * Hp + 2 * Hp * Hp + Hp * Cp)   # bf16, single-buffered (resident)
    biases = 4 * (3 * Hp + Cp)                       # f32
    x_io = 2 * (2 * TB * D)                          # bf16 input, double-buffered
    out_io = 2 * (2 * TB * Cp)                       # bf16 output, double-buffered
    temps = 3 * (4 * TB * Hp)                        # f32 accumulators / bf16 activations headroom
    return weights + biases + x_io + out_io + temps


def simple_nn_kernel(
    x_ref,              # (TB, D)   bf16   (BN already folded into w1/b1)
    w1_ref, b1_ref,     # (D,  Hp) bf16, (1, Hp) f32
    w2_ref, b2_ref,     # (Hp, Hp) bf16, (1, Hp) f32
    w3_ref, b3_ref,     # (Hp, Hp) bf16, (1, Hp) f32
    w4_ref, b4_ref,     # (Hp, Cp) bf16, (1, Cp) f32
    out_ref,            # (TB, Cp) bf16
    *, relu_bf16: bool,
):
    def hidden_layer(h, w_ref, b_ref):
        acc = jnp.dot(h, w_ref[...], preferred_element_type=jnp.float32) + b_ref[...]
        if relu_bf16:
            # bf16 VALU (v6e/v7x): run the max on packed vregs; identical result.
            return jnp.maximum(acc.astype(jnp.bfloat16), 0)
        return jnp.maximum(acc, 0.0).astype(jnp.bfloat16)

    h = hidden_layer(x_ref[...], w1_ref, b1_ref)   # Layer 1 (BN eval-mode affine folded in)
    h = hidden_layer(h, w2_ref, b2_ref)            # Layer 2
    h = hidden_layer(h, w3_ref, b3_ref)            # Layer 3
    # Dropout(0.2): identity at inference.  Final Linear -> lane-dense padded bf16 logits.
    out = jnp.dot(h, w4_ref[...], preferred_element_type=jnp.float32) + b4_ref[...]
    out_ref[...] = out.astype(out_ref.dtype)


def prepare_params(params, eps: float = 1e-5):
    """Fold BN into the first Linear, pad hidden/class lane dims to multiples of 128 (feature dim
    of x/w1 is left at its native width), cast weights to bf16."""
    D, H = params["w1"].shape
    C = params["w4"].shape[1]
    Hp, Cp = _round_up(H, 128), _round_up(C, 128)

    gamma = params["gamma"].reshape(D)
    beta = params["beta"].reshape(D)
    mean = params["mean"].reshape(D)
    var = params["var"].reshape(D)
    s = gamma * jax.lax.rsqrt(var + eps)              # BN scale
    t = beta - mean * s                               # BN shift
    w1f = params["w1"] * s[:, None]                   # fold scale into w1 rows
    b1f = params["b1"] + t[None, :] @ params["w1"]    # fold shift into b1

    def pad(a, shape):
        return jnp.pad(a, [(0, shape[i] - a.shape[i]) for i in range(a.ndim)])

    return {
        "w1": pad(w1f, (D, Hp)).astype(jnp.bfloat16),
        "b1": pad(b1f, (1, Hp)).astype(jnp.float32),
        "w2": pad(params["w2"], (Hp, Hp)).astype(jnp.bfloat16),
        "b2": pad(params["b2"], (1, Hp)).astype(jnp.float32),
        "w3": pad(params["w3"], (Hp, Hp)).astype(jnp.bfloat16),
        "b3": pad(params["b3"], (1, Hp)).astype(jnp.float32),
        "w4": pad(params["w4"], (Hp, Cp)).astype(jnp.bfloat16),
        "b4": pad(params["b4"], (1, Cp)).astype(jnp.float32),
    }


@functools.partial(jax.jit, static_argnames=("num_classes", "relu_bf16"))
def simple_nn_forward(x, prep, num_classes, relu_bf16=True):
    B, D = x.shape
    Dw, Hp = prep["w1"].shape
    Cp = prep["w4"].shape[1]
    assert Dw == D, "prepare_params feature dim mismatch"

    TB, Bp = _choose_batch_tiling(B)

    xp = x.astype(jnp.bfloat16)
    if Bp != B:
        xp = jnp.pad(xp, ((0, Bp - B), (0, 0)))      # pad batch dim only

    const = lambda i: (0, 0)                         # weights/biases: same block every grid step
    resident = {"pipeline_mode": pl.Buffered(1)}     # single-buffer the VMEM-resident operands

    est = _vmem_bytes_estimate(TB, D, Hp, Cp)
    vmem_limit = int(min(48 * 1024 * 1024, max(32 * 1024 * 1024, 2 * est)))

    kernel = functools.partial(simple_nn_kernel, relu_bf16=relu_bf16)

    out = pl.pallas_call(
        kernel,
        out_shape=jax.ShapeDtypeStruct((Bp, Cp), jnp.bfloat16),
        grid=(Bp // TB,),
        in_specs=[
            pl.BlockSpec((TB, D), lambda i: (i, 0)),           # x: tiled over batch, native D
            pl.BlockSpec((D, Hp), const, **resident),
            pl.BlockSpec((1, Hp), const, **resident),
            pl.BlockSpec((Hp, Hp), const, **resident),
            pl.BlockSpec((1, Hp), const, **resident),
            pl.BlockSpec((Hp, Hp), const, **resident),
            pl.BlockSpec((1, Hp), const, **resident),
            pl.BlockSpec((Hp, Cp), const, **resident),
            pl.BlockSpec((1, Cp), const, **resident),
        ],
        out_specs=pl.BlockSpec((TB, Cp), lambda i: (i, 0)),
        compiler_params=pltpu.CompilerParams(
            dimension_semantics=("parallel",),
            vmem_limit_bytes=vmem_limit,
        ),
    )(xp, prep["w1"], prep["b1"], prep["w2"], prep["b2"],
      prep["w3"], prep["b3"], prep["w4"], prep["b4"])
    return out[:B, :num_classes].astype(jnp.float32)


def init_params(key, input_dim, hidden_dim, num_classes):
    """Deterministic init matching the PyTorch module's parameter shapes (weights as (in, out))."""
    ks = jax.random.split(key, 8)

    def linear(kw, kb, fan_in, fan_out):
        bound = 1.0 / jnp.sqrt(fan_in)
        w = jax.random.uniform(kw, (fan_in, fan_out), jnp.float32, -bound, bound)
        b = jax.random.uniform(kb, (1, fan_out), jnp.float32, -bound, bound)
        return w, b

    w1, b1 = linear(ks[0], ks[1], input_dim, hidden_dim)
    w2, b2 = linear(ks[2], ks[3], hidden_dim, hidden_dim)
    w3, b3 = linear(ks[4], ks[5], hidden_dim, hidden_dim)
    w4, b4 = linear(ks[6], ks[7], hidden_dim, num_classes)

    return {
        # BatchNorm1d(input_dim) default init: gamma=1, beta=0, running_mean=0, running_var=1
        "gamma": jnp.ones((1, input_dim), jnp.float32),
        "beta": jnp.zeros((1, input_dim), jnp.float32),
        "mean": jnp.zeros((1, input_dim), jnp.float32),
        "var": jnp.ones((1, input_dim), jnp.float32),
        "w1": w1, "b1": b1,
        "w2": w2, "b2": b2,
        "w3": w3, "b3": b3,
        "w4": w4, "b4": b4,
    }


def reference_forward(x, p, eps=1e-5):
    """Pure f32 reference with the original module semantics (eval mode)."""
    hp = jax.lax.Precision.HIGHEST
    h = (x - p["mean"]) / jnp.sqrt(p["var"] + eps) * p["gamma"] + p["beta"]
    h = jnp.maximum(jnp.dot(h, p["w1"], precision=hp) + p["b1"], 0.0)
    h = jnp.maximum(jnp.dot(h, p["w2"], precision=hp) + p["b2"], 0.0)
    h = jnp.maximum(jnp.dot(h, p["w3"], precision=hp) + p["b3"], 0.0)
    return jnp.dot(h, p["w4"], precision=hp) + p["b4"]


if __name__ == "__main__":
    # Small shapes consistent with the module's forward: x is (batch, input_dim).
    B, INPUT_DIM, HIDDEN_DIM, NUM_CLASSES = 8, 32, 512, 16

    key = jax.random.PRNGKey(0)
    kx, kp = jax.random.split(key)
    x = jax.random.normal(kx, (B, INPUT_DIM), jnp.float32)
    params = init_params(kp, INPUT_DIM, HIDDEN_DIM, NUM_CLASSES)

    prep = prepare_params(params)
    out = simple_nn_forward(x, prep, NUM_CLASSES, relu_bf16=_has_bf16_valu())
    out = jax.block_until_ready(out)

    ref = reference_forward(x, params)
    assert out.shape == (B, NUM_CLASSES)
    max_err = float(jnp.max(jnp.abs(out - ref)))
    assert jnp.allclose(out, ref, atol=3e-2, rtol=3e-2), (
        f"Pallas output mismatch vs reference (max abs err {max_err})"
    )

    print("KERNEL_OK")
</pallas_src>

<mosaic_0001>
module attributes {stable_mosaic.version = 11 : i64} {
  func.func @simple_nn_kernel(%arg0: i32, %arg1: memref<16x32xbf16, #tpu.memory_space<vmem>>, %arg2: memref<32x512xbf16, #tpu.memory_space<vmem>>, %arg3: memref<1x512xf32, #tpu.memory_space<vmem>>, %arg4: memref<512x512xbf16, #tpu.memory_space<vmem>>, %arg5: memref<1x512xf32, #tpu.memory_space<vmem>>, %arg6: memref<512x512xbf16, #tpu.memory_space<vmem>>, %arg7: memref<1x512xf32, #tpu.memory_space<vmem>>, %arg8: memref<512x128xbf16, #tpu.memory_space<vmem>>, %arg9: memref<1x128xf32, #tpu.memory_space<vmem>>, %arg10: memref<16x128xbf16, #tpu.memory_space<vmem>>) attributes {dimension_semantics = [#tpu.dimension_semantics<parallel>], iteration_bounds = array<i64: 1>, scalar_prefetch = 0 : i64, scratch_operands = 0 : i64, tpu.core_type = #tpu.core_type<tc>, window_params = [{transform_indices = @transform_0, window_bounds = array<i64: 16, 32>}, {pipeline_mode = #tpu.pipeline_mode<synchronous>, transform_indices = @transform_1, window_bounds = array<i64: 32, 512>}, {pipeline_mode = #tpu.pipeline_mode<synchronous>, transform_indices = @transform_2, window_bounds = array<i64: 1, 512>}, {pipeline_mode = #tpu.pipeline_mode<synchronous>, transform_indices = @transform_3, window_bounds = array<i64: 512, 512>}, {pipeline_mode = #tpu.pipeline_mode<synchronous>, transform_indices = @transform_4, window_bounds = array<i64: 1, 512>}, {pipeline_mode = #tpu.pipeline_mode<synchronous>, transform_indices = @transform_5, window_bounds = array<i64: 512, 512>}, {pipeline_mode = #tpu.pipeline_mode<synchronous>, transform_indices = @transform_6, window_bounds = array<i64: 1, 512>}, {pipeline_mode = #tpu.pipeline_mode<synchronous>, transform_indices = @transform_7, window_bounds = array<i64: 512, 128>}, {pipeline_mode = #tpu.pipeline_mode<synchronous>, transform_indices = @transform_8, window_bounds = array<i64: 1, 128>}, {transform_indices = @transform_9, window_bounds = array<i64: 16, 128>}]} {
    %c0 = arith.constant 0 : index
    %c0_0 = arith.constant 0 : index
    %0 = vector.load %arg1[%c0, %c0_0] : memref<16x32xbf16, #tpu.memory_space<vmem>>, vector<16x32xbf16>
    %c0_1 = arith.constant 0 : index
    %c0_2 = arith.constant 0 : index
    %1 = vector.load %arg2[%c0_1, %c0_2] : memref<32x512xbf16, #tpu.memory_space<vmem>>, vector<32x512xbf16>
    %cst = arith.constant dense<0.000000e+00> : vector<16x512xf32>
    %2 = tpu.matmul %0, %1, %cst {dimension_numbers = #tpu.dot_dimension_numbers<[1], [0], [0], [1], [0, 0, 1, 1], [], []>} : vector<16x32xbf16>, vector<32x512xbf16>, vector<16x512xf32> -> vector<16x512xf32>
    %c0_3 = arith.constant 0 : index
    %c0_4 = arith.constant 0 : index
    %3 = vector.load %arg3[%c0_3, %c0_4] : memref<1x512xf32, #tpu.memory_space<vmem>>, vector<1x512xf32>
    %4 = vector.broadcast %3 : vector<1x512xf32> to vector<16x512xf32>
    %5 = arith.addf %2, %4 : vector<16x512xf32>
    %6 = arith.truncf %5 : vector<16x512xf32> to vector<16x512xbf16>
    %cst_5 = arith.constant 0.000000e+00 : bf16
    %7 = vector.broadcast %cst_5 : bf16 to vector<16x512xbf16>
    %8 = arith.maximumf %6, %7 : vector<16x512xbf16>
    %c0_6 = arith.constant 0 : index
    %c0_7 = arith.constant 0 : index
    %9 = vector.load %arg4[%c0_6, %c0_7] : memref<512x512xbf16, #tpu.memory_space<vmem>>, vector<512x512xbf16>
    %cst_8 = arith.constant dense<0.000000e+00> : vector<16x512xf32>
    %10 = tpu.matmul %8, %9, %cst_8 {dimension_numbers = #tpu.dot_dimension_numbers<[1], [0], [0], [1], [0, 0, 1, 1], [], []>} : vector<16x512xbf16>, vector<512x512xbf16>, vector<16x512xf32> -> vector<16x512xf32>
    %c0_9 = arith.constant 0 : index
    %c0_10 = arith.constant 0 : index
    %11 = vector.load %arg5[%c0_9, %c0_10] : memref<1x512xf32, #tpu.memory_space<vmem>>, vector<1x512xf32>
    %12 = vector.broadcast %11 : vector<1x512xf32> to vector<16x512xf32>
    %13 = arith.addf %10, %12 : vector<16x512xf32>
    %14 = arith.truncf %13 : vector<16x512xf32> to vector<16x512xbf16>
    %cst_11 = arith.constant 0.000000e+00 : bf16
    %15 = vector.broadcast %cst_11 : bf16 to vector<16x512xbf16>
    %16 = arith.maximumf %14, %15 : vector<16x512xbf16>
    %c0_12 = arith.constant 0 : index
    %c0_13 = arith.constant 0 : index
    %17 = vector.load %arg6[%c0_12, %c0_13] : memref<512x512xbf16, #tpu.memory_space<vmem>>, vector<512x512xbf16>
    %cst_14 = arith.constant dense<0.000000e+00> : vector<16x512xf32>
    %18 = tpu.matmul %16, %17, %cst_14 {dimension_numbers = #tpu.dot_dimension_numbers<[1], [0], [0], [1], [0, 0, 1, 1], [], []>} : vector<16x512xbf16>, vector<512x512xbf16>, vector<16x512xf32> -> vector<16x512xf32>
    %c0_15 = arith.constant 0 : index
    %c0_16 = arith.constant 0 : index
    %19 = vector.load %arg7[%c0_15, %c0_16] : memref<1x512xf32, #tpu.memory_space<vmem>>, vector<1x512xf32>
    %20 = vector.broadcast %19 : vector<1x512xf32> to vector<16x512xf32>
    %21 = arith.addf %18, %20 : vector<16x512xf32>
    %22 = arith.truncf %21 : vector<16x512xf32> to vector<16x512xbf16>
    %cst_17 = arith.constant 0.000000e+00 : bf16
    %23 = vector.broadcast %cst_17 : bf16 to vector<16x512xbf16>
    %24 = arith.maximumf %22, %23 : vector<16x512xbf16>
    %c0_18 = arith.constant 0 : index
    %c0_19 = arith.constant 0 : index
    %25 = vector.load %arg8[%c0_18, %c0_19] : memref<512x128xbf16, #tpu.memory_space<vmem>>, vector<512x128xbf16>
    %cst_20 = arith.constant dense<0.000000e+00> : vector<16x128xf32>
    %26 = tpu.matmul %24, %25, %cst_20 {dimension_numbers = #tpu.dot_dimension_numbers<[1], [0], [0], [1], [0, 0, 1, 1], [], []>} : vector<16x512xbf16>, vector<512x128xbf16>, vector<16x128xf32> -> vector<16x128xf32>
    %c0_21 = arith.constant 0 : index
    %c0_22 = arith.constant 0 : index
    %27 = vector.load %arg9[%c0_21, %c0_22] : memref<1x128xf32, #tpu.memory_space<vmem>>, vector<1x128xf32>
    %28 = vector.broadcast %27 : vector<1x128xf32> to vector<16x128xf32>
    %29 = arith.addf %26, %28 : vector<16x128xf32>
    %30 = arith.truncf %29 : vector<16x128xf32> to vector<16x128xbf16>
    %c0_23 = arith.constant 0 : index
    %c0_24 = arith.constant 0 : index
    %31 = vector.load %arg10[%c0_23, %c0_24] : memref<16x128xbf16, #tpu.memory_space<vmem>>, vector<16x128xbf16>
    tpu.vector_store %arg10[%c0_23, %c0_24], %30 {strides = array<i32>} : memref<16x128xbf16, #tpu.memory_space<vmem>>, vector<16x128xbf16>,
    return
  }
  func.func @transform_0(%arg0: i32) -> (i32, i32) {
    %c0_i32 = arith.constant 0 : i32
    %c0_i32_0 = arith.constant 0 : i32
    return %arg0, %c0_i32 : i32, i32
  }
  func.func @transform_1(%arg0: i32) -> (i32, i32) {
    %c0_i32 = arith.constant 0 : i32
    %c0_i32_0 = arith.constant 0 : i32
    %c0_i32_1 = arith.constant 0 : i32
    return %c0_i32, %c0_i32_0 : i32, i32
  }
  func.func @transform_2(%arg0: i32) -> (i32, i32) {
    %c0_i32 = arith.constant 0 : i32
    %c0_i32_0 = arith.constant 0 : i32
    %c0_i32_1 = arith.constant 0 : i32
    return %c0_i32, %c0_i32_0 : i32, i32
  }
  func.func @transform_3(%arg0: i32) -> (i32, i32) {
    %c0_i32 = arith.constant 0 : i32
    %c0_i32_0 = arith.constant 0 : i32
    %c0_i32_1 = arith.constant 0 : i32
    return %c0_i32, %c0_i32_0 : i32, i32
  }
  func.func @transform_4(%arg0: i32) -> (i32, i32) {
    %c0_i32 = arith.constant 0 : i32
    %c0_i32_0 = arith.constant 0 : i32
    %c0_i32_1 = arith.constant 0 : i32
    return %c0_i32, %c0_i32_0 : i32, i32
  }
  func.func @transform_5(%arg0: i32) -> (i32, i32) {
    %c0_i32 = arith.constant 0 : i32
    %c0_i32_0 = arith.constant 0 : i32
    %c0_i32_1 = arith.constant 0 : i32
    return %c0_i32, %c0_i32_0 : i32, i32
  }
  func.func @transform_6(%arg0: i32) -> (i32, i32) {
    %c0_i32 = arith.constant 0 : i32
    %c0_i32_0 = arith.constant 0 : i32
    %c0_i32_1 = arith.constant 0 : i32
    return %c0_i32, %c0_i32_0 : i32, i32
  }
  func.func @transform_7(%arg0: i32) -> (i32, i32) {
    %c0_i32 = arith.constant 0 : i32
    %c0_i32_0 = arith.constant 0 : i32
    %c0_i32_1 = arith.constant 0 : i32
    return %c0_i32, %c0_i32_0 : i32, i32
  }
  func.func @transform_8(%arg0: i32) -> (i32, i32) {
    %c0_i32 = arith.constant 0 : i32
    %c0_i32_0 = arith.constant 0 : i32
    %c0_i32_1 = arith.constant 0 : i32
    return %c0_i32, %c0_i32_0 : i32, i32
  }
  func.func @transform_9(%arg0: i32) -> (i32, i32) {
    %c0_i32 = arith.constant 0 : i32
    %c0_i32_0 = arith.constant 0 : i32
    return %arg0, %c0_i32 : i32, i32
  }
}

</mosaic_0001>

<bundles_post_ra>
// kernel: simple_nn_forward.1
= control target key start
LH: loop header
LB: loop body
LE: loop exit
PB: predicated region body
PF: predicated region fallthrough
CT: control target
= control target key end

     0   :  { %14 = vsyncpa [#allocation3], 0  ;;  %s3587_s0 = inlined_call_operand.vmem [shape: bf16[16,32], index: 0, kind: input, shape index: {}]   ;;  %s3588_s1 = inlined_call_operand.hbm [shape: bf16[32,512], index: 1, kind: input, shape index: {}]   ;;  %s3589_s2 = inlined_call_operand.vmem [shape: f32[1,512], index: 2, kind: input, shape index: {}]   ;;  %s3590_s3 = inlined_call_operand.hbm [shape: bf16[512,512], index: 3, kind: input, shape index: {}]   ;;  %s3591_s4 = inlined_call_operand.vmem [shape: f32[1,512], index: 4, kind: input, shape index: {}]   ;;  %s3592_s5 = inlined_call_operand.hbm [shape: bf16[512,512], index: 5, kind: input, shape index: {}]   ;;  %s3593_s6 = inlined_call_operand.vmem [shape: f32[1,512], index: 6, kind: input, shape index: {}]   ;;  %s3594_s7 = inlined_call_operand.hbm [shape: bf16[512,128], index: 7, kind: input, shape index: {}]   ;;  %s3595_s8 = inlined_call_operand.vmem [shape: f32[1,128], index: 8, kind: input, shape index: {}]   ;;  %s3596_s9 = inlined_call_operand.vmem [shape: bf16[16,128], index: 9, kind: output, shape index: {}]  }
   0x1   :  { %15 = vsyncpa [#allocation5], 0 }
   0x2   :  { %16 = vsyncpa [#allocation8], 0  ;;  %s3442_s30 = smov [#allocation4]   ;;  %s3443_s11 = smov [#allocation2]  }
   0x3   :  { %s38_s10 = sshll.u32 %s3442_s30, 4  ;;  %s24_s12 = sshll.u32 %s3443_s11, 4  ;;  %s39_s10 = int_to_ptr.vmem [resolvable:$true] %s38_s10  ;;  %s25_s12 = int_to_ptr.vmem [resolvable:$true] %s24_s12 }
   0x4   :  { %s3364_s13 = scalar_lea.vmem %s39_s10, 16384  ;;  %p3369_p1 = scmp.lt.s32.totalorder %s39_s10, %s39_s10 }
   0x5   :  { %p3365_p0 = scmp.ne.s32.totalorder %s39_s10, %s3364_s13  ;;  %p3370_p2 = scmp.lt.s32.totalorder %s3364_s13, %s3364_s13 }
   0x7   :  { %p3371_p3 = por %p3370_p2, %p3369_p1 }
   0x9   :  { %p3372_p4 = pnand %p3371_p3, %p3365_p0 }
   0xb   :  { %3375 = shalt.err (!%p3372_p4)
}
   0xc   :  { %s3444_s14 = smov 256   ;;  %s3445_s15 = smov 16  }
   0xd   :  { %44 = dma.hbm_to_vmem [thread:$0]  %s3590_s3, 16384, %s39_s10, [#allocation5], %s3444_s14, %s3444_s14, %s3445_s15  }
   0xe   :  { %s3384_s18 = scalar_lea.vmem %s25_s12, 1024  ;;  %p3389_p6 = scmp.lt.s32.totalorder %s25_s12, %s25_s12 }
   0xf   :  { %p3385_p5 = scmp.ne.s32.totalorder %s25_s12, %s3384_s18  ;;  %p3390_p7 = scmp.lt.s32.totalorder %s3384_s18, %s3384_s18 }
  0x11   :  { %p3391_p8 = por %p3390_p7, %p3389_p6 }
  0x13   :  { %p3392_p9 = pnand %p3391_p8, %p3385_p5 }
  0x15   :  { %3395 = shalt.err (!%p3392_p9)
}
  0x16   :  { %30 = dma.hbm_to_vmem [thread:$0]  %s3588_s1, 1024, %s25_s12, [#allocation3], %s3444_s14, %s3444_s14, %s3445_s15  }
  0x17   :  { %s3446_s21 = smov [#allocation6]   ;;  %s3447_s23 = smov [#allocation7]  }
  0x18   :  { %s52_s22 = sshll.u32 %s3446_s21, 4  ;;  %s66_s24 = sshll.u32 %s3447_s23, 4  ;;  %s53_s22 = int_to_ptr.vmem [resolvable:$true] %s52_s22  ;;  %s67_s24 = int_to_ptr.vmem [resolvable:$true] %s66_s24 }
  0x19   :  { %s3404_s25 = scalar_lea.vmem %s53_s22, 16384  ;;  %p3409_p11 = scmp.lt.s32.totalorder %s53_s22, %s53_s22 }
  0x1a   :  { %p3405_p10 = scmp.ne.s32.totalorder %s53_s22, %s3404_s25  ;;  %p3410_p12 = scmp.lt.s32.totalorder %s3404_s25, %s3404_s25 }
  0x1c   :  { %p3411_p13 = por %p3410_p12, %p3409_p11 }
  0x1e   :  { %p3412_p0 = pnand %p3411_p13, %p3405_p10 }
  0x20   :  { %3415 = shalt.err (!%p3412_p0)
}
  0x21   :  { %58 = dma.hbm_to_vmem [thread:$0]  %s3592_s5, 16384, %s53_s22, [#allocation5], %s3444_s14, %s3444_s14, %s3445_s15  }
  0x22   :  { %s3424_s27 = scalar_lea.vmem %s67_s24, 4096  ;;  %p3429_p2 = scmp.lt.s32.totalorder %s67_s24, %s67_s24 }
  0x23   :  { %p3425_p1 = scmp.ne.s32.totalorder %s67_s24, %s3424_s27  ;;  %p3430_p3 = scmp.lt.s32.totalorder %s3424_s27, %s3424_s27 }
  0x25   :  { %p3431_p4 = por %p3430_p3, %p3429_p2 }
  0x27   :  { %p3432_p5 = pnand %p3431_p4, %p3425_p1 }
  0x29   :  { %3435 = shalt.err (!%p3432_p5)
}
  0x2a   :  { %s3448_s1 = smov 64   ;;  %s3449_s28 = smov 4  }
  0x2b   :  { %72 = dma.hbm_to_vmem [thread:$0]  %s3594_s7, 4096, %s67_s24, [#allocation8], %s3448_s1, %s3448_s1, %s3449_s28  }
  0x2c   :  { %3436 = dma.done.wait [#allocation3], 1024  }
  0x2d   :  { %3437 = vsyncadd [#allocation3], 4294966272 }
  0x2e   :  { %3438 = dma.done.wait [#allocation5], 32768  }
  0x2f   :  { %3439 = vsyncadd [#allocation5], 4294934528 }
  0x30   :  { %3440 = dma.done.wait [#allocation8], 4096  }
  0x31   :  { %3441 = vsyncadd [#allocation8], 4294963200  ;;  %v3450_v0 = vmov 0   ;;  %v2927_v1 = vld [vmem:[#allocation2 + $0x24] ss:$16 sps:$4 sm:$0xff]   ;;  %vm165_vm0 = vcmask 261120  }
  0x32   :  { %201 = vmatprep.mubr.bf16.mxu0 %v3450_v0  ;;  %244 = vmatprep.mubr.bf16.mxu1 %v3450_v0  ;;  %v2929_v2 = vld [vmem:[#allocation2 + $0x2c] ss:$16 sps:$4 sm:$0xff]   ;;  %v2931_v3 = vld [vmem:[#allocation2 + $0x20] ss:$16 sps:$4 sm:$0xff]   ;;  %v2932_v4 = vld [vmem:[#allocation2 + $0x28] ss:$16 sps:$4 sm:$0xff]  }
  0x33   :  { %181 = vmatprep.subr.bf16.mxu0 %v2927_v1  ;;  %224 = vmatprep.subr.bf16.mxu1 %v2929_v2  ;;  %v2933_v5 = vld [vmem:[#allocation2 + $0x4] ss:$16 sps:$4 sm:$0xff]   ;;  %v2935_v6 = vld [vmem:[#allocation2 + $0xc] ss:$16 sps:$4 sm:$0xff]   ;;  %v2937_v7 = vld [vmem:[#allocation2] ss:$16 sps:$4 sm:$0xff]  }
  0x34   :  { %182 = vmatpush1.bf16.msra.mxu0 %v2931_v3  ;;  %225 = vmatpush1.bf16.msra.mxu1 %v2932_v4  ;;  %v2938_v8 = vld [vmem:[#allocation2 + $0x8] ss:$16 sps:$4 sm:$0xff]   ;;  %v2939_v9 = vld [vmem:[%s3587_s0] sm:$0xff]  }
  0x35   :  { %183 = vmatprep.subr.bf16.mxu0 %v2933_v5  ;;  %226 = vmatprep.subr.bf16.mxu1 %v2935_v6  ;;  %v2940_v10 = vld [vmem:[#allocation4 + $0xe0] ss:$16 sps:$4 sm:$0xff]   ;;  %v2942_v11 = vld [vmem:[#allocation4 + $0xe4] ss:$16 sps:$4 sm:$0xff]  }
  0x36   :  { %v2943_v12 = vld [vmem:[#allocation4 + $0x2e0] ss:$16 sps:$4 sm:$0xff]   ;;  %v2945_v13 = vld [vmem:[#allocation4 + $0x2e4] ss:$16 sps:$4 sm:$0xff]  }
  0x37   :  { %v2948_v14 = vld [vmem:[#allocation4 + $0xc4] ss:$16 sps:$4 sm:$0xff]   ;;  %v2946_v16 = vld [vmem:[#allocation4 + $0xc0] ss:$16 sps:$4 sm:$0xff]  }
  0x38   :  { %184 = vmatpush1.bf16.msra.mxu0 %v2937_v7  ;;  %227 = vmatpush1.bf16.msra.mxu1 %v2938_v8  ;;  %v2951_v15 = vld [vmem:[#allocation4 + $0x2c4] ss:$16 sps:$4 sm:$0xff]   ;;  %v2949_v17 = vld [vmem:[#allocation4 + $0x2c0] ss:$16 sps:$4 sm:$0xff]  }
  0x39   :  { %1053 = vmatprep.subr.bf16.mxu0 %v2942_v11  ;;  %1096 = vmatprep.subr.bf16.mxu1 %v2945_v13  ;;  %v2954_v18 = vld [vmem:[#allocation4 + $0xa4] ss:$16 sps:$4 sm:$0xff]   ;;  %v2952_v20 = vld [vmem:[#allocation4 + $0xa0] ss:$16 sps:$4 sm:$0xff]   ;;  %v3038_v11 = vld [vmem:[#allocation4 + $0xec] ss:$16 sps:$4 sm:$0xff]   ;;  %v100_v13 = vlaneseq }
  0x3a   :  { %v2957_v19 = vld [vmem:[#allocation4 + $0x2a4] ss:$16 sps:$4 sm:$0xff]   ;;  %v2955_v21 = vld [vmem:[#allocation4 + $0x2a0] ss:$16 sps:$4 sm:$0xff]  }
  0x3b   :  { %2574 = vmatmul.mubr.msk.bf16.vlgmr.msra.gmra.mxu0 %vm165_vm0, %v2939_v9  ;;  %2575 = vmatmul.mubr.msk.bf16.vlgmr.msra.gmra.mxu1 %vm165_vm0, %v2939_v9  ;;  %v2960_v22 = vld [vmem:[#allocation4 + $0x84] ss:$16 sps:$4 sm:$0xff]   ;;  %v2958_v24 = vld [vmem:[#allocation4 + $0x80] ss:$16 sps:$4 sm:$0xff]  }
  0x3c   :  { %1054 = vmatpush1.bf16.msra.mxu0 %v2940_v10  ;;  %1097 = vmatpush1.bf16.msra.mxu1 %v2943_v12  ;;  %v2963_v23 = vld [vmem:[#allocation4 + $0x284] ss:$16 sps:$4 sm:$0xff]   ;;  %v2961_v25 = vld [vmem:[#allocation4 + $0x280] ss:$16 sps:$4 sm:$0xff]   ;;  %v3041_v12 = vld [vmem:[#allocation4 + $0x2ec] ss:$16 sps:$4 sm:$0xff]  }
  0x3d   :  { %1055 = vmatprep.subr.bf16.mxu0 %v2948_v14  ;;  %1098 = vmatprep.subr.bf16.mxu1 %v2951_v15  ;;  %v2966_v26 = vld [vmem:[#allocation4 + $0x64] ss:$16 sps:$4 sm:$0xff]   ;;  %v2964_v28 = vld [vmem:[#allocation4 + $0x60] ss:$16 sps:$4 sm:$0xff]   ;;  %v101_v14 = vshrl.u32 %v100_v13, 7 }
  0x3e   :  { %v2969_v27 = vld [vmem:[#allocation4 + $0x264] ss:$16 sps:$4 sm:$0xff]   ;;  %v2967_v29 = vld [vmem:[#allocation4 + $0x260] ss:$16 sps:$4 sm:$0xff]   ;;  %v3078_v13 = vld [vmem:[#allocation4 + $0x8] ss:$16 sps:$4 sm:$0xff]  }
  0x3f   :  { %v2972_v30 = vld [vmem:[#allocation4 + $0x44] ss:$16 sps:$4 sm:$0xff]   ;;  %v2970_v32 = vld [vmem:[#allocation4 + $0x40] ss:$16 sps:$4 sm:$0xff]   ;;  %v3518_v15 = vsub.s32 0, %v101_v14 }
  0x40   :  { %1056 = vmatpush1.bf16.msra.mxu0 %v2946_v16  ;;  %1099 = vmatpush1.bf16.msra.mxu1 %v2949_v17  ;;  %v2975_v31 = vld [vmem:[#allocation4 + $0x244] ss:$16 sps:$4 sm:$0xff]   ;;  %v2973_v33 = vld [vmem:[#allocation4 + $0x240] ss:$16 sps:$4 sm:$0xff]   ;;  %v3520_v16 = vsub.s32 2, %v101_v14 }
  0x41   :  { %1057 = vmatprep.subr.bf16.mxu0 %v2954_v18  ;;  %1100 = vmatprep.subr.bf16.mxu1 %v2957_v19  ;;  %v2978_v34 = vld [vmem:[#allocation4 + $0x24] ss:$16 sps:$4 sm:$0xff]   ;;  %v2976_v36 = vld [vmem:[#allocation4 + $0x20] ss:$16 sps:$4 sm:$0xff]   ;;  %v3525_v18 = vsub.s32 1, %v101_v14  ;;  %v3527_v19 = vsub.s32 3, %v101_v14 }
  0x42   :  { %v2981_v35 = vld [vmem:[#allocation4 + $0x224] ss:$16 sps:$4 sm:$0xff]   ;;  %v2979_v37 = vld [vmem:[#allocation4 + $0x220] ss:$16 sps:$4 sm:$0xff]   ;;  %v3081_v14 = vld [vmem:[#allocation4 + $0x208] ss:$16 sps:$4 sm:$0xff]  }
  0x43   :  { %v2984_v38 = vld [vmem:[#allocation4 + $0x4] ss:$16 sps:$4 sm:$0xff]   ;;  %v2982_v40 = vld [vmem:[#allocation4] ss:$16 sps:$4 sm:$0xff]  }
  0x44   :  { %1058 = vmatpush1.bf16.msra.mxu0 %v2952_v20  ;;  %1101 = vmatpush1.bf16.msra.mxu1 %v2955_v21  ;;  %v2987_v39 = vld [vmem:[#allocation4 + $0x204] ss:$16 sps:$4 sm:$0xff]   ;;  %v2985_v41 = vld [vmem:[#allocation4 + $0x200] ss:$16 sps:$4 sm:$0xff]  }
  0x45   :  { %1059 = vmatprep.subr.bf16.mxu0 %v2960_v22  ;;  %1102 = vmatprep.subr.bf16.mxu1 %v2963_v23  ;;  %v2990_v42 = vld [vmem:[#allocation4 + $0x1e4] ss:$16 sps:$4 sm:$0xff]   ;;  %v2988_v44 = vld [vmem:[#allocation4 + $0x1e0] ss:$16 sps:$4 sm:$0xff]  }
  0x46   :  { %v2993_v43 = vld [vmem:[#allocation4 + $0x3e4] ss:$16 sps:$4 sm:$0xff]   ;;  %v2991_v45 = vld [vmem:[#allocation4 + $0x3e0] ss:$16 sps:$4 sm:$0xff]  }
  0x47   :  { %v2996_v46 = vld [vmem:[#allocation4 + $0x1c4] ss:$16 sps:$4 sm:$0xff]   ;;  %v2994_v48 = vld [vmem:[#allocation4 + $0x1c0] ss:$16 sps:$4 sm:$0xff]  }
  0x48   :  { %1060 = vmatpush1.bf16.msra.mxu0 %v2958_v24  ;;  %1103 = vmatpush1.bf16.msra.mxu1 %v2961_v25  ;;  %v2999_v47 = vld [vmem:[#allocation4 + $0x3c4] ss:$16 sps:$4 sm:$0xff]   ;;  %v2997_v49 = vld [vmem:[#allocation4 + $0x3c0] ss:$16 sps:$4 sm:$0xff]  }
  0x49   :  { %1061 = vmatprep.subr.bf16.mxu0 %v2966_v26  ;;  %1104 = vmatprep.subr.bf16.mxu1 %v2969_v27  ;;  %v3002_v50 = vld [vmem:[#allocation4 + $0x1a4] ss:$16 sps:$4 sm:$0xff]   ;;  %v3000_v52 = vld [vmem:[#allocation4 + $0x1a0] ss:$16 sps:$4 sm:$0xff]  }
  0x4a   :  { %v3005_v51 = vld [vmem:[#allocation4 + $0x3a4] ss:$16 sps:$4 sm:$0xff]   ;;  %v3003_v53 = vld [vmem:[#allocation4 + $0x3a0] ss:$16 sps:$4 sm:$0xff]  }
  0x4b   :  { %v3008_v54 = vld [vmem:[#allocation4 + $0x184] ss:$16 sps:$4 sm:$0xff]   ;;  %v3006_v56 = vld [vmem:[#allocation4 + $0x180] ss:$16 sps:$4 sm:$0xff]  }
  0x4c   :  { %1062 = vmatpush1.bf16.msra.mxu0 %v2964_v28  ;;  %1105 = vmatpush1.bf16.msra.mxu1 %v2967_v29  ;;  %v3011_v55 = vld [vmem:[#allocation4 + $0x384] ss:$16 sps:$4 sm:$0xff]   ;;  %v3009_v57 = vld [vmem:[#allocation4 + $0x380] ss:$16 sps:$4 sm:$0xff]  }
  0x4d   :  { %1063 = vmatprep.subr.bf16.mxu0 %v2972_v30  ;;  %1106 = vmatprep.subr.bf16.mxu1 %v2975_v31  ;;  %v3014_v58 = vld [vmem:[#allocation4 + $0x164] ss:$16 sps:$4 sm:$0xff]   ;;  %v3012_v60 = vld [vmem:[#allocation4 + $0x160] ss:$16 sps:$4 sm:$0xff]  }
  0x4e   :  { %v3017_v59 = vld [vmem:[#allocation4 + $0x364] ss:$16 sps:$4 sm:$0xff]   ;;  %v3015_v61 = vld [vmem:[#allocation4 + $0x360] ss:$16 sps:$4 sm:$0xff]  }
  0x4f   :  { %v3020_v62 = vld [vmem:[#allocation4 + $0x144] ss:$16 sps:$4 sm:$0xff]   ;;  %v3018_v1 = vld [vmem:[#allocation4 + $0x140] ss:$16 sps:$4 sm:$0xff]  }
  0x50   :  { %1064 = vmatpush1.bf16.msra.mxu0 %v2970_v32  ;;  %1107 = vmatpush1.bf16.msra.mxu1 %v2973_v33  ;;  %v3023_v63 = vld [vmem:[#allocation4 + $0x344] ss:$16 sps:$4 sm:$0xff]   ;;  %v3021_v2 = vld [vmem:[#allocation4 + $0x340] ss:$16 sps:$4 sm:$0xff]  }
  0x51   :  { %1065 = vmatprep.subr.bf16.mxu0 %v2978_v34  ;;  %1108 = vmatprep.subr.bf16.mxu1 %v2981_v35  ;;  %v3026_v3 = vld [vmem:[#allocation4 + $0x124] ss:$16 sps:$4 sm:$0xff]   ;;  %v3024_v5 = vld [vmem:[#allocation4 + $0x120] ss:$16 sps:$4 sm:$0xff]  }
  0x52   :  { %v3029_v4 = vld [vmem:[#allocation4 + $0x324] ss:$16 sps:$4 sm:$0xff]   ;;  %v3027_v6 = vld [vmem:[#allocation4 + $0x320] ss:$16 sps:$4 sm:$0xff]  }
  0x53   :  { %v3032_v7 = vld [vmem:[#allocation4 + $0x104] ss:$16 sps:$4 sm:$0xff]   ;;  %v3030_v9 = vld [vmem:[#allocation4 + $0x100] ss:$16 sps:$4 sm:$0xff]  }
  0x54   :  { %1066 = vmatpush1.bf16.msra.mxu0 %v2976_v36  ;;  %1109 = vmatpush1.bf16.msra.mxu1 %v2979_v37  ;;  %v3035_v8 = vld [vmem:[#allocation4 + $0x304] ss:$16 sps:$4 sm:$0xff]   ;;  %v3033_v10 = vld [vmem:[#allocation4 + $0x300] ss:$16 sps:$4 sm:$0xff]  }
  0x55   :  { %1067 = vmatprep.subr.bf16.mxu0 %v2984_v38  ;;  %1110 = vmatprep.subr.bf16.mxu1 %v2987_v39  ;;  %v98_v17 = vld [vmem:[%s3589_s2] sm:$0xf] }
  0x56   :  { %v103_v22 = vrot.slane %v98_v17, %v3518_v15  ;;  %v111_v23 = vrot.slane %v98_v17, %v3520_v16  ;;  %v107_v26 = vrot.slane %v98_v17, %v3525_v18  ;;  %v115_v27 = vrot.slane %v98_v17, %v3527_v19  ;;  %v3086_v17 = vld [vmem:[#allocation4 + $0x1ec] ss:$16 sps:$4 sm:$0xff]  }
  0x58   :  { %1068 = vmatpush1.bf16.msra.mxu0 %v2982_v40  ;;  %1111 = vmatpush1.bf16.msra.mxu1 %v2985_v41 }
  0x59   :  { %1069 = vmatprep.subr.bf16.mxu0 %v2990_v42  ;;  %1112 = vmatprep.subr.bf16.mxu1 %v2993_v43 }
  0x5c   :  { %1070 = vmatpush2.bf16.msra.mxu0 %v2988_v44  ;;  %1113 = vmatpush2.bf16.msra.mxu1 %v2991_v45 }
  0x5d   :  { %1071 = vmatprep.subr.bf16.mxu0 %v2996_v46  ;;  %1114 = vmatprep.subr.bf16.mxu1 %v2999_v47  ;;  %v3036_v46 = vld [vmem:[#allocation4 + $0xe8] ss:$16 sps:$4 sm:$0xff]  }
  0x5e   :  { %v3039_v47 = vld [vmem:[#allocation4 + $0x2e8] ss:$16 sps:$4 sm:$0xff]  }
  0x60   :  { %1072 = vmatpush2.bf16.msra.mxu0 %v2994_v48  ;;  %1115 = vmatpush2.bf16.msra.mxu1 %v2997_v49 }
  0x61   :  { %1073 = vmatprep.subr.bf16.mxu0 %v3002_v50  ;;  %1116 = vmatprep.subr.bf16.mxu1 %v3005_v51  ;;  %v3044_v50 = vld [vmem:[#allocation4 + $0xcc] ss:$16 sps:$4 sm:$0xff]  }
  0x62   :  { %v3047_v51 = vld [vmem:[#allocation4 + $0x2cc] ss:$16 sps:$4 sm:$0xff]  }
  0x64   :  { %1074 = vmatpush2.bf16.msra.mxu0 %v3000_v52  ;;  %1117 = vmatpush2.bf16.msra.mxu1 %v3003_v53  ;;  %v3042_v52 = vld [vmem:[#allocation4 + $0xc8] ss:$16 sps:$4 sm:$0xff]  }
  0x65   :  { %1075 = vmatprep.subr.bf16.mxu0 %v3008_v54  ;;  %1118 = vmatprep.subr.bf16.mxu1 %v3011_v55  ;;  %v3045_v53 = vld [vmem:[#allocation4 + $0x2c8] ss:$16 sps:$4 sm:$0xff]   ;;  %v3050_v54 = vld [vmem:[#allocation4 + $0xac] ss:$16 sps:$4 sm:$0xff]  }
  0x66   :  { %v3053_v55 = vld [vmem:[#allocation4 + $0x2ac] ss:$16 sps:$4 sm:$0xff]  }
  0x68   :  { %1076 = vmatpush2.bf16.msra.mxu0 %v3006_v56  ;;  %1119 = vmatpush2.bf16.msra.mxu1 %v3009_v57  ;;  %v3048_v56 = vld [vmem:[#allocation4 + $0xa8] ss:$16 sps:$4 sm:$0xff]  }
  0x69   :  { %1077 = vmatprep.subr.bf16.mxu0 %v3014_v58  ;;  %1120 = vmatprep.subr.bf16.mxu1 %v3017_v59  ;;  %v3051_v57 = vld [vmem:[#allocation4 + $0x2a8] ss:$16 sps:$4 sm:$0xff]   ;;  %v3056_v58 = vld [vmem:[#allocation4 + $0x8c] ss:$16 sps:$4 sm:$0xff]  }
  0x6a   :  { %v3059_v59 = vld [vmem:[#allocation4 + $0x28c] ss:$16 sps:$4 sm:$0xff]  }
  0x6c   :  { %1078 = vmatpush2.bf16.msra.mxu0 %v3012_v60  ;;  %1121 = vmatpush2.bf16.msra.mxu1 %v3015_v61  ;;  %v3054_v60 = vld [vmem:[#allocation4 + $0x88] ss:$16 sps:$4 sm:$0xff]  }
  0x6d   :  { %1079 = vmatprep.subr.bf16.mxu0 %v3020_v62  ;;  %1122 = vmatprep.subr.bf16.mxu1 %v3023_v63  ;;  %v3057_v61 = vld [vmem:[#allocation4 + $0x288] ss:$16 sps:$4 sm:$0xff]   ;;  %v3062_v62 = vld [vmem:[#allocation4 + $0x6c] ss:$16 sps:$4 sm:$0xff]  }
  0x6e   :  { %v3065_v63 = vld [vmem:[#allocation4 + $0x26c] ss:$16 sps:$4 sm:$0xff]  }
  0x70   :  { %1080 = vmatpush2.bf16.msra.mxu0 %v3018_v1  ;;  %1123 = vmatpush2.bf16.msra.mxu1 %v3021_v2  ;;  %v3060_v1 = vld [vmem:[#allocation4 + $0x68] ss:$16 sps:$4 sm:$0xff]  }
  0x71   :  { %1081 = vmatprep.subr.bf16.mxu0 %v3026_v3  ;;  %1124 = vmatprep.subr.bf16.mxu1 %v3029_v4  ;;  %v3063_v2 = vld [vmem:[#allocation4 + $0x268] ss:$16 sps:$4 sm:$0xff]   ;;  %v3068_v3 = vld [vmem:[#allocation4 + $0x4c] ss:$16 sps:$4 sm:$0xff]  }
  0x72   :  { %v3071_v4 = vld [vmem:[#allocation4 + $0x24c] ss:$16 sps:$4 sm:$0xff]  }
  0x74   :  { %1082 = vmatpush2.bf16.msra.mxu0 %v3024_v5  ;;  %1125 = vmatpush2.bf16.msra.mxu1 %v3027_v6  ;;  %v3066_v5 = vld [vmem:[#allocation4 + $0x48] ss:$16 sps:$4 sm:$0xff]  }
  0x75   :  { %1083 = vmatprep.subr.bf16.mxu0 %v3032_v7  ;;  %1126 = vmatprep.subr.bf16.mxu1 %v3035_v8  ;;  %v3069_v6 = vld [vmem:[#allocation4 + $0x248] ss:$16 sps:$4 sm:$0xff]   ;;  %v3074_v7 = vld [vmem:[#allocation4 + $0x2c] ss:$16 sps:$4 sm:$0xff]  }
  0x76   :  { %v3077_v8 = vld [vmem:[#allocation4 + $0x22c] ss:$16 sps:$4 sm:$0xff]  }
  0x78   :  { %1084 = vmatpush2.bf16.msra.mxu0 %v3030_v9  ;;  %1127 = vmatpush2.bf16.msra.mxu1 %v3033_v10  ;;  %v3072_v9 = vld [vmem:[#allocation4 + $0x28] ss:$16 sps:$4 sm:$0xff]  }
  0x79   :  { %1139 = vmatprep.subr.bf16.mxu0 %v3038_v11  ;;  %1182 = vmatprep.subr.bf16.mxu1 %v3041_v12  ;;  %v3075_v10 = vld [vmem:[#allocation4 + $0x228] ss:$16 sps:$4 sm:$0xff]   ;;  %v3080_v11 = vld [vmem:[#allocation4 + $0xc] ss:$16 sps:$4 sm:$0xff]  }
  0x7a   :  { %v3083_v12 = vld [vmem:[#allocation4 + $0x20c] ss:$16 sps:$4 sm:$0xff]  }
  0xfb   :  { %v203_v20 = vpop.f32.mrf.mxu0  ;;  %v246_v21 = vpop.f32.mrf.mxu1 }
  0xfc   :  { %v204_v32 = vadd.f32 %v203_v20, %v103_v22  ;;  %v247_v33 = vadd.f32 %v246_v21, %v111_v23  ;;  %v3089_v20 = vld [vmem:[#allocation4 + $0x3ec] ss:$16 sps:$4 sm:$0xff]   ;;  %v3084_v21 = vld [vmem:[#allocation4 + $0x1e8] ss:$16 sps:$4 sm:$0xff]  }
  0xfd   :  { %v205_v24 = vpop.f32.mrf.mxu0  ;;  %v248_v25 = vpop.f32.mrf.mxu1 }
  0xfe   :  { %v206_v36 = vadd.f32 %v205_v24, %v107_v26  ;;  %v249_v37 = vadd.f32 %v248_v25, %v115_v27  ;;  %v3095_v24 = vld [vmem:[#allocation4 + $0x3cc] ss:$16 sps:$4 sm:$0xff]   ;;  %v3090_v25 = vld [vmem:[#allocation4 + $0x1c8] ss:$16 sps:$4 sm:$0xff]  }
  0xff   :  { %v207_v28 = vpop.f32.mrf.mxu0  ;;  %v250_v29 = vpop.f32.mrf.mxu1 }
 0x100   :  { %v208_v30 = vadd.f32 %v207_v28, %v103_v22  ;;  %v251_v31 = vadd.f32 %v250_v29, %v111_v23  ;;  %v3087_v22 = vld [vmem:[#allocation4 + $0x3e8] ss:$16 sps:$4 sm:$0xff]   ;;  %v3092_v23 = vld [vmem:[#allocation4 + $0x1cc] ss:$16 sps:$4 sm:$0xff]  }
 0x101   :  { %v209_v34 = vpop.f32.mrf.mxu0  ;;  %v252_v35 = vpop.f32.mrf.mxu1  ;;  %v3101_v28 = vld [vmem:[#allocation4 + $0x3ac] ss:$16 sps:$4 sm:$0xff]   ;;  %v3096_v29 = vld [vmem:[#allocation4 + $0x1a8] ss:$16 sps:$4 sm:$0xff]  }
 0x102   :  { %v210_v38 = vadd.f32 %v209_v34, %v107_v26  ;;  %v253_v39 = vadd.f32 %v252_v35, %v115_v27  ;;  %v255_v40 = vpack.c.bf16 %v208_v30, %v204_v32  ;;  %v257_v41 = vpack.c.bf16 %v251_v31, %v247_v33  ;;  %v3093_v26 = vld [vmem:[#allocation4 + $0x3c8] ss:$16 sps:$4 sm:$0xff]   ;;  %v3098_v27 = vld [vmem:[#allocation4 + $0x1ac] ss:$16 sps:$4 sm:$0xff]  }
 0x103   :  { %v3099_v30 = vld [vmem:[#allocation4 + $0x3a8] ss:$16 sps:$4 sm:$0xff]   ;;  %v3104_v31 = vld [vmem:[#allocation4 + $0x18c] ss:$16 sps:$4 sm:$0xff]  }
 0x104   :  { %v256_v42 = vpack.c.bf16 %v210_v38, %v206_v36  ;;  %v258_v43 = vpack.c.bf16 %v253_v39, %v249_v37  ;;  %v3536_v48 = vmax.bf16 %v3450_v0, %v255_v40  ;;  %v3539_v49 = vmax.bf16 %v3450_v0, %v257_v41  ;;  %v3107_v32 = vld [vmem:[#allocation4 + $0x38c] ss:$16 sps:$4 sm:$0xff]   ;;  %v3102_v33 = vld [vmem:[#allocation4 + $0x188] ss:$16 sps:$4 sm:$0xff]  }
 0x105   :  { %v3105_v34 = vld [vmem:[#allocation4 + $0x388] ss:$16 sps:$4 sm:$0xff]   ;;  %v3110_v35 = vld [vmem:[#allocation4 + $0x16c] ss:$16 sps:$4 sm:$0xff]  }
 0x106   :  { %v260_v44 = vmax.bf16 %v3450_v0, %v256_v42  ;;  %v262_v45 = vmax.bf16 %v3450_v0, %v258_v43  ;;  %v3113_v36 = vld [vmem:[#allocation4 + $0x36c] ss:$16 sps:$4 sm:$0xff]   ;;  %v3108_v37 = vld [vmem:[#allocation4 + $0x168] ss:$16 sps:$4 sm:$0xff]  }
 0x107   :  { %v3111_v38 = vld [vmem:[#allocation4 + $0x368] ss:$16 sps:$4 sm:$0xff]   ;;  %v3116_v39 = vld [vmem:[#allocation4 + $0x14c] ss:$16 sps:$4 sm:$0xff]  }
 0x108   :  { %1085 = vmatprep.mubr.bf16.mxu0 %v260_v44  ;;  %1128 = vmatprep.mubr.bf16.mxu1 %v262_v45  ;;  %v3119_v40 = vld [vmem:[#allocation4 + $0x34c] ss:$16 sps:$4 sm:$0xff]   ;;  %v3114_v41 = vld [vmem:[#allocation4 + $0x148] ss:$16 sps:$4 sm:$0xff]  }
 0x109   :  { %1086 = vmatmul.mubr.bf16.vlgmr.msra.gmra.mxu0 %v3536_v48  ;;  %1129 = vmatmul.mubr.bf16.vlgmr.msra.gmra.mxu1 %v3539_v49  ;;  %v3117_v42 = vld [vmem:[#allocation4 + $0x348] ss:$16 sps:$4 sm:$0xff]   ;;  %v3122_v43 = vld [vmem:[#allocation4 + $0x12c] ss:$16 sps:$4 sm:$0xff]  }
 0x10a   :  { %1140 = vmatpush1.bf16.msra.mxu0 %v3036_v46  ;;  %1183 = vmatpush1.bf16.msra.mxu1 %v3039_v47  ;;  %v3123_v46 = vld [vmem:[#allocation4 + $0x328] ss:$16 sps:$4 sm:$0xff]   ;;  %v3128_v47 = vld [vmem:[#allocation4 + $0x10c] ss:$16 sps:$4 sm:$0xff]  }
 0x10b   :  { %1171 = vmatprep.mubr.bf16.mxu0 %v260_v44  ;;  %1214 = vmatprep.mubr.bf16.mxu1 %v262_v45  ;;  %v3125_v44 = vld [vmem:[#allocation4 + $0x32c] ss:$16 sps:$4 sm:$0xff]   ;;  %v3120_v45 = vld [vmem:[#allocation4 + $0x128] ss:$16 sps:$4 sm:$0xff]  }
 0x10c   :  { %1141 = vmatprep.subr.bf16.mxu0 %v3044_v50  ;;  %1184 = vmatprep.subr.bf16.mxu1 %v3047_v51  ;;  %v3131_v50 = vld [vmem:[#allocation4 + $0x30c] ss:$16 sps:$4 sm:$0xff]   ;;  %v3126_v51 = vld [vmem:[#allocation4 + $0x108] ss:$16 sps:$4 sm:$0xff]  }
 0x10e   :  { %1142 = vmatpush1.bf16.msra.mxu0 %v3042_v52  ;;  %1185 = vmatpush1.bf16.msra.mxu1 %v3045_v53  ;;  %v3129_v52 = vld [vmem:[#allocation4 + $0x308] ss:$16 sps:$4 sm:$0xff]   ;;  %v3134_v53 = vld [vmem:[#allocation6 + $0xe4] ss:$16 sps:$4 sm:$0xff]  }
 0x10f   :  { %1143 = vmatprep.subr.bf16.mxu0 %v3050_v54  ;;  %1186 = vmatprep.subr.bf16.mxu1 %v3053_v55  ;;  %v3132_v54 = vld [vmem:[#allocation6 + $0xe0] ss:$16 sps:$4 sm:$0xff]   ;;  %v3137_v55 = vld [vmem:[#allocation6 + $0xc4] ss:$16 sps:$4 sm:$0xff]  }
 0x112   :  { %1144 = vmatpush1.bf16.msra.mxu0 %v3048_v56  ;;  %1187 = vmatpush1.bf16.msra.mxu1 %v3051_v57  ;;  %v3135_v56 = vld [vmem:[#allocation6 + $0xc0] ss:$16 sps:$4 sm:$0xff]   ;;  %v3140_v57 = vld [vmem:[#allocation6 + $0xa4] ss:$16 sps:$4 sm:$0xff]  }
 0x113   :  { %1145 = vmatprep.subr.bf16.mxu0 %v3056_v58  ;;  %1188 = vmatprep.subr.bf16.mxu1 %v3059_v59  ;;  %v3138_v58 = vld [vmem:[#allocation6 + $0xa0] ss:$16 sps:$4 sm:$0xff]   ;;  %v3143_v59 = vld [vmem:[#allocation6 + $0x84] ss:$16 sps:$4 sm:$0xff]  }
 0x116   :  { %1146 = vmatpush1.bf16.msra.mxu0 %v3054_v60  ;;  %1189 = vmatpush1.bf16.msra.mxu1 %v3057_v61  ;;  %v3141_v60 = vld [vmem:[#allocation6 + $0x80] ss:$16 sps:$4 sm:$0xff]   ;;  %v3146_v61 = vld [vmem:[#allocation6 + $0x64] ss:$16 sps:$4 sm:$0xff]  }
 0x117   :  { %1147 = vmatprep.subr.bf16.mxu0 %v3062_v62  ;;  %1190 = vmatprep.subr.bf16.mxu1 %v3065_v63  ;;  %v3180_v62 = vld [vmem:[#allocation6 + $0x2e0] ss:$16 sps:$4 sm:$0xff]   ;;  %v3182_v63 = vld [vmem:[#allocation6 + $0x2e4] ss:$16 sps:$4 sm:$0xff]  }
 0x11a   :  { %1148 = vmatpush1.bf16.msra.mxu0 %v3060_v1  ;;  %1191 = vmatpush1.bf16.msra.mxu1 %v3063_v2  ;;  %v3144_v1 = vld [vmem:[#allocation6 + $0x60] ss:$16 sps:$4 sm:$0xff]  }
 0x11b   :  { %1149 = vmatprep.subr.bf16.mxu0 %v3068_v3  ;;  %1192 = vmatprep.subr.bf16.mxu1 %v3071_v4  ;;  %v3186_v2 = vld [vmem:[#allocation6 + $0x2c0] ss:$16 sps:$4 sm:$0xff]   ;;  %v3188_v3 = vld [vmem:[#allocation6 + $0x2c4] ss:$16 sps:$4 sm:$0xff]  }
 0x11c   :  { %v3152_v4 = vld [vmem:[#allocation6 + $0x24] ss:$16 sps:$4 sm:$0xff]  }
 0x11e   :  { %1150 = vmatpush1.bf16.msra.mxu0 %v3066_v5  ;;  %1193 = vmatpush1.bf16.msra.mxu1 %v3069_v6  ;;  %v3150_v5 = vld [vmem:[#allocation6 + $0x20] ss:$16 sps:$4 sm:$0xff]  }
 0x11f   :  { %1151 = vmatprep.subr.bf16.mxu0 %v3074_v7  ;;  %1194 = vmatprep.subr.bf16.mxu1 %v3077_v8  ;;  %v3192_v6 = vld [vmem:[#allocation6 + $0x2a0] ss:$16 sps:$4 sm:$0xff]   ;;  %v3194_v7 = vld [vmem:[#allocation6 + $0x2a4] ss:$16 sps:$4 sm:$0xff]  }
 0x120   :  { %v3155_v8 = vld [vmem:[#allocation6 + $0x4] ss:$16 sps:$4 sm:$0xff]  }
 0x122   :  { %1152 = vmatpush1.bf16.msra.mxu0 %v3072_v9  ;;  %1195 = vmatpush1.bf16.msra.mxu1 %v3075_v10  ;;  %v3153_v9 = vld [vmem:[#allocation6] ss:$16 sps:$4 sm:$0xff]  }
 0x123   :  { %1153 = vmatprep.subr.bf16.mxu0 %v3080_v11  ;;  %1196 = vmatprep.subr.bf16.mxu1 %v3083_v12  ;;  %v3198_v10 = vld [vmem:[#allocation6 + $0x280] ss:$16 sps:$4 sm:$0xff]   ;;  %v3200_v11 = vld [vmem:[#allocation6 + $0x284] ss:$16 sps:$4 sm:$0xff]  }
 0x124   :  { %v3158_v12 = vld [vmem:[#allocation6 + $0x1e4] ss:$16 sps:$4 sm:$0xff]  }
 0x126   :  { %1154 = vmatpush1.bf16.msra.mxu0 %v3078_v13  ;;  %1197 = vmatpush1.bf16.msra.mxu1 %v3081_v14  ;;  %v3156_v13 = vld [vmem:[#allocation6 + $0x1e0] ss:$16 sps:$4 sm:$0xff]  }
 0x127   :  { %1155 = vmatprep.subr.bf16.mxu0 %v3086_v17  ;;  %1198 = vmatprep.subr.bf16.mxu1 %v3089_v20  ;;  %v3204_v14 = vld [vmem:[#allocation6 + $0x260] ss:$16 sps:$4 sm:$0xff]   ;;  %v3206_v17 = vld [vmem:[#allocation6 + $0x264] ss:$16 sps:$4 sm:$0xff]  }
 0x128   :  { %v3161_v20 = vld [vmem:[#allocation6 + $0x1c4] ss:$16 sps:$4 sm:$0xff]  }
 0x12a   :  { %1156 = vmatpush2.bf16.msra.mxu0 %v3084_v21  ;;  %1199 = vmatpush2.bf16.msra.mxu1 %v3087_v22  ;;  %v3159_v21 = vld [vmem:[#allocation6 + $0x1c0] ss:$16 sps:$4 sm:$0xff]  }
 0x12b   :  { %1157 = vmatprep.subr.bf16.mxu0 %v3092_v23  ;;  %1200 = vmatprep.subr.bf16.mxu1 %v3095_v24  ;;  %v3210_v22 = vld [vmem:[#allocation6 + $0x240] ss:$16 sps:$4 sm:$0xff]   ;;  %v3212_v23 = vld [vmem:[#allocation6 + $0x244] ss:$16 sps:$4 sm:$0xff]  }
 0x12c   :  { %v3164_v24 = vld [vmem:[#allocation6 + $0x1a4] ss:$16 sps:$4 sm:$0xff]  }
 0x12e   :  { %1158 = vmatpush2.bf16.msra.mxu0 %v3090_v25  ;;  %1201 = vmatpush2.bf16.msra.mxu1 %v3093_v26  ;;  %v3162_v25 = vld [vmem:[#allocation6 + $0x1a0] ss:$16 sps:$4 sm:$0xff]  }
 0x12f   :  { %1159 = vmatprep.subr.bf16.mxu0 %v3098_v27  ;;  %1202 = vmatprep.subr.bf16.mxu1 %v3101_v28  ;;  %v3216_v26 = vld [vmem:[#allocation6 + $0x220] ss:$16 sps:$4 sm:$0xff]   ;;  %v3218_v27 = vld [vmem:[#allocation6 + $0x224] ss:$16 sps:$4 sm:$0xff]  }
 0x130   :  { %v3167_v28 = vld [vmem:[#allocation6 + $0x184] ss:$16 sps:$4 sm:$0xff]  }
 0x132   :  { %1160 = vmatpush2.bf16.msra.mxu0 %v3096_v29  ;;  %1203 = vmatpush2.bf16.msra.mxu1 %v3099_v30  ;;  %v3165_v29 = vld [vmem:[#allocation6 + $0x180] ss:$16 sps:$4 sm:$0xff]  }
 0x133   :  { %1161 = vmatprep.subr.bf16.mxu0 %v3104_v31  ;;  %1204 = vmatprep.subr.bf16.mxu1 %v3107_v32  ;;  %v3222_v30 = vld [vmem:[#allocation6 + $0x200] ss:$16 sps:$4 sm:$0xff]   ;;  %v3224_v31 = vld [vmem:[#allocation6 + $0x204] ss:$16 sps:$4 sm:$0xff]  }
 0x134   :  { %v3170_v32 = vld [vmem:[#allocation6 + $0x164] ss:$16 sps:$4 sm:$0xff]  }
 0x136   :  { %1162 = vmatpush2.bf16.msra.mxu0 %v3102_v33  ;;  %1205 = vmatpush2.bf16.msra.mxu1 %v3105_v34  ;;  %v3168_v33 = vld [vmem:[#allocation6 + $0x160] ss:$16 sps:$4 sm:$0xff]  }
 0x137   :  { %1163 = vmatprep.subr.bf16.mxu0 %v3110_v35  ;;  %1206 = vmatprep.subr.bf16.mxu1 %v3113_v36  ;;  %v3228_v34 = vld [vmem:[#allocation6 + $0x3e0] ss:$16 sps:$4 sm:$0xff]   ;;  %v3230_v35 = vld [vmem:[#allocation6 + $0x3e4] ss:$16 sps:$4 sm:$0xff]  }
 0x138   :  { %v3173_v36 = vld [vmem:[#allocation6 + $0x144] ss:$16 sps:$4 sm:$0xff]  }
 0x13a   :  { %1164 = vmatpush2.bf16.msra.mxu0 %v3108_v37  ;;  %1207 = vmatpush2.bf16.msra.mxu1 %v3111_v38  ;;  %v3171_v37 = vld [vmem:[#allocation6 + $0x140] ss:$16 sps:$4 sm:$0xff]  }
 0x13b   :  { %1165 = vmatprep.subr.bf16.mxu0 %v3116_v39  ;;  %1208 = vmatprep.subr.bf16.mxu1 %v3119_v40  ;;  %v3234_v38 = vld [vmem:[#allocation6 + $0x3c0] ss:$16 sps:$4 sm:$0xff]   ;;  %v3236_v39 = vld [vmem:[#allocation6 + $0x3c4] ss:$16 sps:$4 sm:$0xff]  }
 0x13c   :  { %v3176_v40 = vld [vmem:[#allocation6 + $0x124] ss:$16 sps:$4 sm:$0xff]  }
 0x13e   :  { %1166 = vmatpush2.bf16.msra.mxu0 %v3114_v41  ;;  %1209 = vmatpush2.bf16.msra.mxu1 %v3117_v42  ;;  %v3174_v41 = vld [vmem:[#allocation6 + $0x120] ss:$16 sps:$4 sm:$0xff]  }
 0x13f   :  { %1167 = vmatprep.subr.bf16.mxu0 %v3122_v43  ;;  %1210 = vmatprep.subr.bf16.mxu1 %v3125_v44  ;;  %v3240_v42 = vld [vmem:[#allocation6 + $0x3a0] ss:$16 sps:$4 sm:$0xff]   ;;  %v3242_v43 = vld [vmem:[#allocation6 + $0x3a4] ss:$16 sps:$4 sm:$0xff]  }
 0x140   :  { %v3179_v44 = vld [vmem:[#allocation6 + $0x104] ss:$16 sps:$4 sm:$0xff]  }
 0x142   :  { %1168 = vmatpush2.bf16.msra.mxu0 %v3120_v45  ;;  %1211 = vmatpush2.bf16.msra.mxu1 %v3123_v46  ;;  %v3177_v45 = vld [vmem:[#allocation6 + $0x100] ss:$16 sps:$4 sm:$0xff]  }
 0x143   :  { %1169 = vmatprep.subr.bf16.mxu0 %v3128_v47  ;;  %1212 = vmatprep.subr.bf16.mxu1 %v3131_v50  ;;  %v3246_v46 = vld [vmem:[#allocation6 + $0x380] ss:$16 sps:$4 sm:$0xff]   ;;  %v3248_v47 = vld [vmem:[#allocation6 + $0x384] ss:$16 sps:$4 sm:$0xff]   ;;  %v3185_v50 = vld [vmem:[#allocation6 + $0xec] ss:$16 sps:$4 sm:$0xff]  }
 0x146   :  { %1170 = vmatpush2.bf16.msra.mxu0 %v3126_v51  ;;  %1213 = vmatpush2.bf16.msra.mxu1 %v3129_v52  ;;  %v3252_v51 = vld [vmem:[#allocation6 + $0x360] ss:$16 sps:$4 sm:$0xff]   ;;  %v3254_v52 = vld [vmem:[#allocation6 + $0x364] ss:$16 sps:$4 sm:$0xff]  }
 0x147   :  { %2023 = vmatprep.subr.bf16.mxu0 %v3134_v53  ;;  %2066 = vmatprep.subr.bf16.mxu1 %v3182_v63  ;;  %v3260_v53 = vld [vmem:[#allocation6 + $0x344] ss:$16 sps:$4 sm:$0xff]  }
 0x149   :  { %1172 = vmatmul.mubr.bf16.vlgmr.msra.gmra.mxu0 %v3536_v48  ;;  %1215 = vmatmul.mubr.bf16.vlgmr.msra.gmra.mxu1 %v3539_v49  ;;  %v3149_v48 = vld [vmem:[#allocation6 + $0x44] ss:$16 sps:$4 sm:$0xff]   ;;  %v3147_v49 = vld [vmem:[#allocation6 + $0x40] ss:$16 sps:$4 sm:$0xff]  }
 0x14a   :  { %2024 = vmatpush1.bf16.msra.mxu0 %v3132_v54  ;;  %2067 = vmatpush1.bf16.msra.mxu1 %v3180_v62  ;;  %v3258_v54 = vld [vmem:[#allocation6 + $0x340] ss:$16 sps:$4 sm:$0xff]  }
 0x14b   :  { %2025 = vmatprep.subr.bf16.mxu0 %v3137_v55  ;;  %2068 = vmatprep.subr.bf16.mxu1 %v3188_v3  ;;  %v3266_v55 = vld [vmem:[#allocation6 + $0x324] ss:$16 sps:$4 sm:$0xff]  }
 0x14e   :  { %2026 = vmatpush1.bf16.msra.mxu0 %v3135_v56  ;;  %2069 = vmatpush1.bf16.msra.mxu1 %v3186_v2  ;;  %v3264_v56 = vld [vmem:[#allocation6 + $0x320] ss:$16 sps:$4 sm:$0xff]  }
 0x14f   :  { %2027 = vmatprep.subr.bf16.mxu0 %v3140_v57  ;;  %2070 = vmatprep.subr.bf16.mxu1 %v3194_v7  ;;  %v3272_v57 = vld [vmem:[#allocation6 + $0x304] ss:$16 sps:$4 sm:$0xff]  }
 0x152   :  { %2028 = vmatpush1.bf16.msra.mxu0 %v3138_v58  ;;  %2071 = vmatpush1.bf16.msra.mxu1 %v3192_v6  ;;  %v3270_v58 = vld [vmem:[#allocation6 + $0x300] ss:$16 sps:$4 sm:$0xff]  }
 0x153   :  { %2029 = vmatprep.subr.bf16.mxu0 %v3143_v59  ;;  %2072 = vmatprep.subr.bf16.mxu1 %v3200_v11  ;;  %v3278_v59 = vld [vmem:[#allocation6 + $0x2ec] ss:$16 sps:$4 sm:$0xff]  }
 0x156   :  { %2030 = vmatpush1.bf16.msra.mxu0 %v3141_v60  ;;  %2073 = vmatpush1.bf16.msra.mxu1 %v3198_v10  ;;  %v3548_v60 = vld [vmem:[%s3591_s4] sm:$0xf] }
 0x157   :  { %2031 = vmatprep.subr.bf16.mxu0 %v3146_v61  ;;  %2074 = vmatprep.subr.bf16.mxu1 %v3206_v17  ;;  %v396_v61 = vrot.slane %v3548_v60, %v3518_v15 }
 0x15a   :  { %2032 = vmatpush1.bf16.msra.mxu0 %v3144_v1  ;;  %2075 = vmatpush1.bf16.msra.mxu1 %v3204_v14  ;;  %v400_v1 = vrot.slane %v3548_v60, %v3525_v18 }
 0x15b   :  { %2033 = vmatprep.subr.bf16.mxu0 %v3149_v48  ;;  %2076 = vmatprep.subr.bf16.mxu1 %v3212_v23  ;;  %v3191_v23 = vld [vmem:[#allocation6 + $0xcc] ss:$16 sps:$4 sm:$0xff]  }
 0x15e   :  { %2034 = vmatpush1.bf16.msra.mxu0 %v3147_v49  ;;  %2077 = vmatpush1.bf16.msra.mxu1 %v3210_v22 }
 0x15f   :  { %2035 = vmatprep.subr.bf16.mxu0 %v3152_v4  ;;  %2078 = vmatprep.subr.bf16.mxu1 %v3218_v27  ;;  %v3203_v27 = vld [vmem:[#allocation6 + $0x8c] ss:$16 sps:$4 sm:$0xff]  }
 0x162   :  { %2036 = vmatpush1.bf16.msra.mxu0 %v3150_v5  ;;  %2079 = vmatpush1.bf16.msra.mxu1 %v3216_v26  ;;  %v3195_v26 = vld [vmem:[#allocation6 + $0xa8] ss:$16 sps:$4 sm:$0xff]  }
 0x163   :  { %2037 = vmatprep.subr.bf16.mxu0 %v3155_v8  ;;  %2080 = vmatprep.subr.bf16.mxu1 %v3224_v31  ;;  %v3215_v31 = vld [vmem:[#allocation6 + $0x4c] ss:$16 sps:$4 sm:$0xff]  }
 0x166   :  { %2038 = vmatpush1.bf16.msra.mxu0 %v3153_v9  ;;  %2081 = vmatpush1.bf16.msra.mxu1 %v3222_v30  ;;  %v3207_v30 = vld [vmem:[#allocation6 + $0x68] ss:$16 sps:$4 sm:$0xff]  }
 0x167   :  { %2039 = vmatprep.subr.bf16.mxu0 %v3158_v12  ;;  %2082 = vmatprep.subr.bf16.mxu1 %v3230_v35  ;;  %v3227_v35 = vld [vmem:[#allocation6 + $0xc] ss:$16 sps:$4 sm:$0xff]  }
 0x16a   :  { %2040 = vmatpush2.bf16.msra.mxu0 %v3156_v13  ;;  %2083 = vmatpush2.bf16.msra.mxu1 %v3228_v34  ;;  %v3219_v34 = vld [vmem:[#allocation6 + $0x28] ss:$16 sps:$4 sm:$0xff]  }
 0x16b   :  { %2041 = vmatprep.subr.bf16.mxu0 %v3161_v20  ;;  %2084 = vmatprep.subr.bf16.mxu1 %v3236_v39  ;;  %v3239_v39 = vld [vmem:[#allocation6 + $0x1cc] ss:$16 sps:$4 sm:$0xff]  }
 0x16e   :  { %2042 = vmatpush2.bf16.msra.mxu0 %v3159_v21  ;;  %2085 = vmatpush2.bf16.msra.mxu1 %v3234_v38  ;;  %v3183_v21 = vld [vmem:[#allocation6 + $0xe8] ss:$16 sps:$4 sm:$0xff]  }
 0x16f   :  { %2043 = vmatprep.subr.bf16.mxu0 %v3164_v24  ;;  %2086 = vmatprep.subr.bf16.mxu1 %v3242_v43  ;;  %v3189_v24 = vld [vmem:[#allocation6 + $0xc8] ss:$16 sps:$4 sm:$0xff]   ;;  %v3251_v43 = vld [vmem:[#allocation6 + $0x18c] ss:$16 sps:$4 sm:$0xff]  }
 0x170   :  { %v3231_v38 = vld [vmem:[#allocation6 + $0x1e8] ss:$16 sps:$4 sm:$0xff]  }
 0x172   :  { %2044 = vmatpush2.bf16.msra.mxu0 %v3162_v25  ;;  %2087 = vmatpush2.bf16.msra.mxu1 %v3240_v42  ;;  %v3197_v25 = vld [vmem:[#allocation6 + $0xac] ss:$16 sps:$4 sm:$0xff]   ;;  %v3243_v42 = vld [vmem:[#allocation6 + $0x1a8] ss:$16 sps:$4 sm:$0xff]  }
 0x173   :  { %2045 = vmatprep.subr.bf16.mxu0 %v3167_v28  ;;  %2088 = vmatprep.subr.bf16.mxu1 %v3248_v47  ;;  %v3201_v28 = vld [vmem:[#allocation6 + $0x88] ss:$16 sps:$4 sm:$0xff]   ;;  %v3263_v47 = vld [vmem:[#allocation6 + $0x14c] ss:$16 sps:$4 sm:$0xff]  }
 0x176   :  { %2046 = vmatpush2.bf16.msra.mxu0 %v3165_v29  ;;  %2089 = vmatpush2.bf16.msra.mxu1 %v3246_v46  ;;  %v3209_v29 = vld [vmem:[#allocation6 + $0x6c] ss:$16 sps:$4 sm:$0xff]   ;;  %v3255_v46 = vld [vmem:[#allocation6 + $0x168] ss:$16 sps:$4 sm:$0xff]  }
 0x177   :  { %2047 = vmatprep.subr.bf16.mxu0 %v3170_v32  ;;  %2090 = vmatprep.subr.bf16.mxu1 %v3254_v52  ;;  %v3213_v32 = vld [vmem:[#allocation6 + $0x48] ss:$16 sps:$4 sm:$0xff]  }
 0x17a   :  { %2048 = vmatpush2.bf16.msra.mxu0 %v3168_v33  ;;  %2091 = vmatpush2.bf16.msra.mxu1 %v3252_v51  ;;  %v3221_v33 = vld [vmem:[#allocation6 + $0x2c] ss:$16 sps:$4 sm:$0xff]  }
 0x17b   :  { %2049 = vmatprep.subr.bf16.mxu0 %v3173_v36  ;;  %2092 = vmatprep.subr.bf16.mxu1 %v3260_v53  ;;  %v3225_v36 = vld [vmem:[#allocation6 + $0x8] ss:$16 sps:$4 sm:$0xff]   ;;  %v408_v53 = vrot.slane %v3548_v60, %v3527_v19 }
 0x17e   :  { %2050 = vmatpush2.bf16.msra.mxu0 %v3171_v37  ;;  %2093 = vmatpush2.bf16.msra.mxu1 %v3258_v54  ;;  %v3233_v37 = vld [vmem:[#allocation6 + $0x1ec] ss:$16 sps:$4 sm:$0xff]   ;;  %v3261_v54 = vld [vmem:[#allocation6 + $0x148] ss:$16 sps:$4 sm:$0xff]  }
 0x17f   :  { %2051 = vmatprep.subr.bf16.mxu0 %v3176_v40  ;;  %2094 = vmatprep.subr.bf16.mxu1 %v3266_v55  ;;  %v3237_v40 = vld [vmem:[#allocation6 + $0x1c8] ss:$16 sps:$4 sm:$0xff]  }
 0x182   :  { %2052 = vmatpush2.bf16.msra.mxu0 %v3174_v41  ;;  %2095 = vmatpush2.bf16.msra.mxu1 %v3264_v56  ;;  %v3245_v41 = vld [vmem:[#allocation6 + $0x1ac] ss:$16 sps:$4 sm:$0xff]  }
 0x183   :  { %2053 = vmatprep.subr.bf16.mxu0 %v3179_v44  ;;  %2096 = vmatprep.subr.bf16.mxu1 %v3272_v57  ;;  %v3249_v44 = vld [vmem:[#allocation6 + $0x188] ss:$16 sps:$4 sm:$0xff]   ;;  %v3269_v57 = vld [vmem:[#allocation6 + $0x12c] ss:$16 sps:$4 sm:$0xff]  }
 0x186   :  { %2054 = vmatpush2.bf16.msra.mxu0 %v3177_v45  ;;  %2097 = vmatpush2.bf16.msra.mxu1 %v3270_v58  ;;  %v3257_v45 = vld [vmem:[#allocation6 + $0x16c] ss:$16 sps:$4 sm:$0xff]  }
 0x187   :  { %2109 = vmatprep.subr.bf16.mxu0 %v3185_v50  ;;  %2152 = vmatprep.subr.bf16.mxu1 %v3278_v59  ;;  %v404_v50 = vrot.slane %v3548_v60, %v3520_v16 }
 0x1c9   :  { %v1087_v62 = vpop.f32.mrf.mxu0  ;;  %v1130_v63 = vpop.f32.mrf.mxu1 }
 0x1ca   :  { %v1088_v2 = vadd.f32 %v1087_v62, %v396_v61 }
 0x1cb   :  { %v1089_v48 = vpop.f32.mrf.mxu0  ;;  %v1132_v49 = vpop.f32.mrf.mxu1 }
 0x1cc   :  { %v1090_v5 = vadd.f32 %v1089_v48, %v400_v1  ;;  %v1131_v10 = vadd.f32 %v1130_v63, %v1088_v2 }
 0x1cd   :  { %v1091_v3 = vpop.f32.mrf.mxu0  ;;  %v1134_v4 = vpop.f32.mrf.mxu1 }
 0x1ce   :  { %v1092_v6 = vadd.f32 %v1091_v3, %v396_v61  ;;  %v1133_v12 = vadd.f32 %v1132_v49, %v1090_v5  ;;  %v3275_v49 = vld [vmem:[#allocation6 + $0x10c] ss:$16 sps:$4 sm:$0xff]  }
 0x1cf   :  { %v1093_v7 = vpop.f32.mrf.mxu0  ;;  %v1136_v11 = vpop.f32.mrf.mxu1 }
 0x1d0   :  { %v1135_v8 = vadd.f32 %v1134_v4, %v1092_v6  ;;  %v1094_v9 = vadd.f32 %v1093_v7, %v400_v1  ;;  %v3267_v1 = vld [vmem:[#allocation6 + $0x128] ss:$16 sps:$4 sm:$0xff]  }
 0x1d1   :  { %v3273_v7 = vld [vmem:[#allocation6 + $0x108] ss:$16 sps:$4 sm:$0xff]  }
 0x1d2   :  { %v1137_v13 = vadd.f32 %v1136_v11, %v1094_v9  ;;  %v1225_v14 = vpack.c.bf16 %v1135_v8, %v1131_v10  ;;  %v3276_v11 = vld [vmem:[#allocation6 + $0x2e8] ss:$16 sps:$4 sm:$0xff]  }
 0x1d4   :  { %v1226_v17 = vpack.c.bf16 %v1137_v13, %v1133_v12  ;;  %v3556_v22 = vmax.bf16 %v3450_v0, %v1225_v14  ;;  %v3281_v13 = vld [vmem:[#allocation6 + $0x2cc] ss:$16 sps:$4 sm:$0xff]   ;;  %v3279_v14 = vld [vmem:[#allocation6 + $0x2c8] ss:$16 sps:$4 sm:$0xff]  }
 0x1d6   :  { %v1230_v20 = vmax.bf16 %v3450_v0, %v1226_v17  ;;  %v3284_v17 = vld [vmem:[#allocation6 + $0x2ac] ss:$16 sps:$4 sm:$0xff]  }
 0x1d8   :  { %2055 = vmatprep.mubr.bf16.mxu0 %v1230_v20 }
 0x1d9   :  { %2056 = vmatmul.mubr.bf16.vlgmr.msra.gmra.mxu0 %v3556_v22 }
 0x1da   :  { %2110 = vmatpush1.bf16.msra.mxu0 %v3183_v21  ;;  %2141 = vmatprep.mubr.bf16.mxu0 %v1230_v20  ;;  %v3282_v20 = vld [vmem:[#allocation6 + $0x2a8] ss:$16 sps:$4 sm:$0xff]   ;;  %v3287_v21 = vld [vmem:[#allocation6 + $0x28c] ss:$16 sps:$4 sm:$0xff]  }
 0x1db   :  { %2111 = vmatprep.subr.bf16.mxu0 %v3191_v23  ;;  %v3324_v23 = vld [vmem:[#allocation7 + $0x78] sm:$0xff]  }
 0x1de   :  { %2112 = vmatpush1.bf16.msra.mxu0 %v3189_v24  ;;  %v3325_v24 = vld [vmem:[#allocation7 + $0x38] sm:$0xff]  }
 0x1df   :  { %2113 = vmatprep.subr.bf16.mxu0 %v3197_v25  ;;  %v3326_v25 = vld [vmem:[#allocation7 + $0x70] sm:$0xff]  }
 0x1e2   :  { %2114 = vmatpush1.bf16.msra.mxu0 %v3195_v26  ;;  %v3285_v26 = vld [vmem:[#allocation6 + $0x288] ss:$16 sps:$4 sm:$0xff]  }
 0x1e3   :  { %2115 = vmatprep.subr.bf16.mxu0 %v3203_v27  ;;  %v3290_v27 = vld [vmem:[#allocation6 + $0x26c] ss:$16 sps:$4 sm:$0xff]  }
 0x1e6   :  { %2116 = vmatpush1.bf16.msra.mxu0 %v3201_v28  ;;  %v3327_v28 = vld [vmem:[#allocation7 + $0x30] sm:$0xff]  }
 0x1e7   :  { %2117 = vmatprep.subr.bf16.mxu0 %v3209_v29  ;;  %v3288_v29 = vld [vmem:[#allocation6 + $0x268] ss:$16 sps:$4 sm:$0xff]  }
 0x1ea   :  { %2118 = vmatpush1.bf16.msra.mxu0 %v3207_v30  ;;  %v3293_v30 = vld [vmem:[#allocation6 + $0x24c] ss:$16 sps:$4 sm:$0xff]  }
 0x1eb   :  { %2119 = vmatprep.subr.bf16.mxu0 %v3215_v31  ;;  %v3329_v31 = vld [vmem:[#allocation7 + $0x28] sm:$0xff]  }
 0x1ee   :  { %2120 = vmatpush1.bf16.msra.mxu0 %v3213_v32  ;;  %v3330_v32 = vld [vmem:[#allocation7 + $0x60] sm:$0xff]  }
 0x1ef   :  { %2121 = vmatprep.subr.bf16.mxu0 %v3221_v33  ;;  %v3291_v33 = vld [vmem:[#allocation6 + $0x248] ss:$16 sps:$4 sm:$0xff]  }
 0x1f2   :  { %2122 = vmatpush1.bf16.msra.mxu0 %v3219_v34  ;;  %v3296_v34 = vld [vmem:[#allocation6 + $0x22c] ss:$16 sps:$4 sm:$0xff]  }
 0x1f3   :  { %2123 = vmatprep.subr.bf16.mxu0 %v3227_v35  ;;  %v3331_v35 = vld [vmem:[#allocation7 + $0x20] sm:$0xff]  }
 0x1f6   :  { %2124 = vmatpush1.bf16.msra.mxu0 %v3225_v36  ;;  %v3332_v36 = vld [vmem:[#allocation7 + $0x58] sm:$0xff]  }
 0x1f7   :  { %2125 = vmatprep.subr.bf16.mxu0 %v3233_v37  ;;  %v3294_v37 = vld [vmem:[#allocation6 + $0x228] ss:$16 sps:$4 sm:$0xff]  }
 0x1fa   :  { %2126 = vmatpush2.bf16.msra.mxu0 %v3231_v38  ;;  %v3299_v38 = vld [vmem:[#allocation6 + $0x20c] ss:$16 sps:$4 sm:$0xff]  }
 0x1fb   :  { %2127 = vmatprep.subr.bf16.mxu0 %v3239_v39  ;;  %v3333_v39 = vld [vmem:[#allocation7 + $0x18] sm:$0xff]  }
 0x1fe   :  { %2128 = vmatpush2.bf16.msra.mxu0 %v3237_v40  ;;  %v3297_v40 = vld [vmem:[#allocation6 + $0x208] ss:$16 sps:$4 sm:$0xff]  }
 0x1ff   :  { %2129 = vmatprep.subr.bf16.mxu0 %v3245_v41  ;;  %v3302_v41 = vld [vmem:[#allocation6 + $0x3ec] ss:$16 sps:$4 sm:$0xff]  }
 0x202   :  { %2130 = vmatpush2.bf16.msra.mxu0 %v3243_v42  ;;  %v3300_v42 = vld [vmem:[#allocation6 + $0x3e8] ss:$16 sps:$4 sm:$0xff]  }
 0x203   :  { %2131 = vmatprep.subr.bf16.mxu0 %v3251_v43  ;;  %v3305_v43 = vld [vmem:[#allocation6 + $0x3cc] ss:$16 sps:$4 sm:$0xff]  }
 0x206   :  { %2132 = vmatpush2.bf16.msra.mxu0 %v3249_v44  ;;  %v3303_v44 = vld [vmem:[#allocation6 + $0x3c8] ss:$16 sps:$4 sm:$0xff]  }
 0x207   :  { %2133 = vmatprep.subr.bf16.mxu0 %v3257_v45  ;;  %v3308_v45 = vld [vmem:[#allocation6 + $0x3ac] ss:$16 sps:$4 sm:$0xff]  }
 0x209   :  { %v1173_v51 = vpop.f32.mrf.mxu0  ;;  %v1216_v52 = vpop.f32.mrf.mxu1 }
 0x20a   :  { %2134 = vmatpush2.bf16.msra.mxu0 %v3255_v46  ;;  %v1174_v58 = vadd.f32 %v1173_v51, %v404_v50  ;;  %v3306_v46 = vld [vmem:[#allocation6 + $0x3a8] ss:$16 sps:$4 sm:$0xff]   ;;  %v3314_v51 = vld [vmem:[#allocation6 + $0x36c] ss:$16 sps:$4 sm:$0xff]  }
 0x20b   :  { %v1175_v55 = vpop.f32.mrf.mxu0  ;;  %v1218_v56 = vpop.f32.mrf.mxu1  ;;  %2135 = vmatprep.subr.bf16.mxu0 %v3263_v47  ;;  %v3311_v47 = vld [vmem:[#allocation6 + $0x38c] ss:$16 sps:$4 sm:$0xff]  }
 0x20c   :  { %v1176_v62 = vadd.f32 %v1175_v55, %v408_v53  ;;  %v1217_v4 = vadd.f32 %v1216_v52, %v1174_v58  ;;  %v3312_v52 = vld [vmem:[#allocation6 + $0x368] ss:$16 sps:$4 sm:$0xff]   ;;  %v3320_v55 = vld [vmem:[#allocation6 + $0x32c] ss:$16 sps:$4 sm:$0xff]  }
 0x20d   :  { %v1177_v59 = vpop.f32.mrf.mxu0  ;;  %v1220_v61 = vpop.f32.mrf.mxu1  ;;  %v3321_v58 = vld [vmem:[#allocation6 + $0x308] ss:$16 sps:$4 sm:$0xff]  }
 0x20e   :  { %v1178_v63 = vadd.f32 %v1177_v59, %v404_v50  ;;  %2136 = vmatpush2.bf16.msra.mxu0 %v3261_v54  ;;  %v1219_v60 = vadd.f32 %v1218_v56, %v1176_v62  ;;  %v3309_v50 = vld [vmem:[#allocation6 + $0x388] ss:$16 sps:$4 sm:$0xff]   ;;  %v3334_v59 = vld [vmem:[#allocation7 + $0x50] sm:$0xff]  }
 0x20f   :  { %v1179_v48 = vpop.f32.mrf.mxu0  ;;  %2137 = vmatprep.subr.bf16.mxu0 %v3269_v57  ;;  %v1222_v5 = vpop.f32.mrf.mxu1  ;;  %v3315_v54 = vld [vmem:[#allocation6 + $0x348] ss:$16 sps:$4 sm:$0xff]   ;;  %v3323_v57 = vld [vmem:[#allocation6 + $0x30c] ss:$16 sps:$4 sm:$0xff]  }
 0x210   :  { %v1221_v2 = vadd.f32 %v1220_v61, %v1178_v63  ;;  %v1180_v3 = vadd.f32 %v1179_v48, %v408_v53  ;;  %v3317_v53 = vld [vmem:[#allocation6 + $0x34c] ss:$16 sps:$4 sm:$0xff]   ;;  %v3318_v56 = vld [vmem:[#allocation6 + $0x328] ss:$16 sps:$4 sm:$0xff]   ;;  %v3335_v61 = vld [vmem:[#allocation7 + $0x10] sm:$0xff]  }
 0x211   :  { %v3336_v62 = vld [vmem:[#allocation7 + $0x48] sm:$0xff]   ;;  %v3339_v48 = vld [vmem:[#allocation7] sm:$0xff]  }
 0x212   :  { %v1223_v6 = vadd.f32 %v1222_v5, %v1180_v3  ;;  %2138 = vmatpush2.bf16.msra.mxu0 %v3267_v1  ;;  %v1227_v8 = vpack.c.bf16 %v1221_v2, %v1217_v4  ;;  %v3337_v63 = vld [vmem:[#allocation7 + $0x8] sm:$0xff]   ;;  %v3338_v1 = vld [vmem:[#allocation7 + $0x40] sm:$0xff]   ;;  %v3341_v2 = vld [vmem:[#allocation7 + $0xb8] sm:$0xff]  }
 0x213   :  { %2139 = vmatprep.subr.bf16.mxu0 %v3275_v49  ;;  %v3340_v49 = vld [vmem:[#allocation7 + $0xf8] sm:$0xff]   ;;  %v3342_v3 = vld [vmem:[#allocation7 + $0xf0] sm:$0xff]   ;;  %v3344_v5 = vld [vmem:[#allocation7 + $0xe8] sm:$0xff]  }
 0x214   :  { %v1228_v9 = vpack.c.bf16 %v1223_v6, %v1219_v60  ;;  %v3565_v12 = vmax.bf16 %v3450_v0, %v1227_v8  ;;  %v3343_v4 = vld [vmem:[#allocation7 + $0xb0] sm:$0xff]   ;;  %v3345_v60 = vld [vmem:[#allocation7 + $0xa8] sm:$0xff]   ;;  %v3346_v6 = vld [vmem:[#allocation7 + $0xe0] sm:$0xff]  }
 0x215   :  { %v3348_v8 = vld [vmem:[#allocation7 + $0xd8] sm:$0xff]  }
 0x216   :  { %2140 = vmatpush2.bf16.msra.mxu0 %v3273_v7  ;;  %v1232_v10 = vmax.bf16 %v3450_v0, %v1228_v9  ;;  %v3347_v7 = vld [vmem:[#allocation7 + $0xa0] sm:$0xff]   ;;  %v3349_v9 = vld [vmem:[#allocation7 + $0x98] sm:$0xff]  }
 0x217   :  { %2874 = vmatprep.subr.bf16.mxu0 %v3324_v23  ;;  %v1361_v23 = vld [vmem:[%s3593_s6] sm:$0xf] }
 0x218   :  { %2098 = vmatprep.mubr.bf16.mxu1 %v1232_v10 }
 0x219   :  { %2099 = vmatmul.mubr.bf16.vlgmr.msra.gmra.mxu1 %v3565_v12  ;;  %2142 = vmatmul.mubr.bf16.vlgmr.msra.gmra.mxu0 %v3556_v22  ;;  %v3328_v22 = vld [vmem:[#allocation7 + $0x68] sm:$0xff]  }
 0x21a   :  { %2153 = vmatpush1.bf16.msra.mxu1 %v3276_v11  ;;  %2184 = vmatprep.mubr.bf16.mxu1 %v1232_v10  ;;  %v3350_v10 = vld [vmem:[#allocation7 + $0xd0] sm:$0xff]  }
 0x21b   :  { %2154 = vmatprep.subr.bf16.mxu1 %v3281_v13  ;;  %2875 = vmatpush3.bf16.msra.mxu0 %v3325_v24  ;;  %v3351_v11 = vld [vmem:[#allocation7 + $0x90] sm:$0xff]   ;;  %v3353_v13 = vld [vmem:[#allocation7 + $0x88] sm:$0xff]  }
 0x21c   :  { %2876 = vmatprep.subr.bf16.mxu0 %v3326_v25  ;;  %v1366_v25 = vrot.slane %v1361_v23, %v3518_v15 }
 0x21e   :  { %2155 = vmatpush1.bf16.msra.mxu1 %v3279_v14  ;;  %v3354_v14 = vld [vmem:[#allocation7 + $0xc0] sm:$0xff]  }
 0x21f   :  { %2156 = vmatprep.subr.bf16.mxu1 %v3284_v17  ;;  %2877 = vmatpush3.bf16.msra.mxu0 %v3327_v28  ;;  %v3355_v17 = vld [vmem:[#allocation7 + $0x80] sm:$0xff]  }
 0x220   :  { %2878 = vmatprep.subr.bf16.mxu0 %v3328_v22 }
 0x222   :  { %2157 = vmatpush1.bf16.msra.mxu1 %v3282_v20 }
 0x223   :  { %2158 = vmatprep.subr.bf16.mxu1 %v3287_v21  ;;  %2879 = vmatpush3.bf16.msra.mxu0 %v3329_v31 }
 0x224   :  { %2880 = vmatprep.subr.bf16.mxu0 %v3330_v32 }
 0x226   :  { %2159 = vmatpush1.bf16.msra.mxu1 %v3285_v26 }
 0x227   :  { %2160 = vmatprep.subr.bf16.mxu1 %v3290_v27  ;;  %2881 = vmatpush3.bf16.msra.mxu0 %v3331_v35  ;;  %v1370_v27 = vrot.slane %v1361_v23, %v3525_v18 }
 0x228   :  { %2882 = vmatprep.subr.bf16.mxu0 %v3332_v36 }
 0x22a   :  { %2161 = vmatpush1.bf16.msra.mxu1 %v3288_v29 }
 0x22b   :  { %2162 = vmatprep.subr.bf16.mxu1 %v3293_v30  ;;  %2883 = vmatpush3.bf16.msra.mxu0 %v3333_v39 }
 0x22c   :  { %2884 = vmatprep.subr.bf16.mxu0 %v3334_v59 }
 0x22e   :  { %2163 = vmatpush1.bf16.msra.mxu1 %v3291_v33 }
 0x22f   :  { %2164 = vmatprep.subr.bf16.mxu1 %v3296_v34  ;;  %2885 = vmatpush3.bf16.msra.mxu0 %v3335_v61 }
 0x230   :  { %2886 = vmatprep.subr.bf16.mxu0 %v3336_v62 }
 0x232   :  { %2165 = vmatpush1.bf16.msra.mxu1 %v3294_v37 }
 0x233   :  { %2166 = vmatprep.subr.bf16.mxu1 %v3299_v38  ;;  %2887 = vmatpush3.bf16.msra.mxu0 %v3337_v63 }
 0x234   :  { %2888 = vmatprep.subr.bf16.mxu0 %v3338_v1 }
 0x236   :  { %2167 = vmatpush1.bf16.msra.mxu1 %v3297_v40 }
 0x237   :  { %2168 = vmatprep.subr.bf16.mxu1 %v3302_v41  ;;  %2889 = vmatpush3.bf16.msra.mxu0 %v3339_v48 }
 0x23a   :  { %2169 = vmatpush2.bf16.msra.mxu1 %v3300_v42 }
 0x23b   :  { %2170 = vmatprep.subr.bf16.mxu1 %v3305_v43 }
 0x23e   :  { %2171 = vmatpush2.bf16.msra.mxu1 %v3303_v44  ;;  %v1374_v44 = vrot.slane %v1361_v23, %v3520_v16 }
 0x23f   :  { %2172 = vmatprep.subr.bf16.mxu1 %v3308_v45 }
 0x242   :  { %2173 = vmatpush2.bf16.msra.mxu1 %v3306_v46  ;;  %v1378_v46 = vrot.slane %v1361_v23, %v3527_v19 }
 0x243   :  { %2174 = vmatprep.subr.bf16.mxu1 %v3311_v47 }
 0x246   :  { %2175 = vmatpush2.bf16.msra.mxu1 %v3309_v50 }
 0x247   :  { %2176 = vmatprep.subr.bf16.mxu1 %v3314_v51 }
 0x24a   :  { %2177 = vmatpush2.bf16.msra.mxu1 %v3312_v52 }
 0x24b   :  { %2178 = vmatprep.subr.bf16.mxu1 %v3317_v53 }
 0x24e   :  { %2179 = vmatpush2.bf16.msra.mxu1 %v3315_v54 }
 0x24f   :  { %2180 = vmatprep.subr.bf16.mxu1 %v3320_v55 }
 0x252   :  { %2181 = vmatpush2.bf16.msra.mxu1 %v3318_v56 }
 0x253   :  { %2182 = vmatprep.subr.bf16.mxu1 %v3323_v57 }
 0x256   :  { %2183 = vmatpush2.bf16.msra.mxu1 %v3321_v58 }
 0x257   :  { %2896 = vmatprep.subr.bf16.mxu1 %v3340_v49 }
 0x259   :  { %2185 = vmatmul.mubr.bf16.vlgmr.msra.gmra.mxu1 %v3565_v12  ;;  %v3352_v12 = vld [vmem:[#allocation7 + $0xc8] sm:$0xff]  }
 0x25a   :  { %2897 = vmatpush3.bf16.msra.mxu1 %v3341_v2 }
 0x25b   :  { %2898 = vmatprep.subr.bf16.mxu1 %v3342_v3 }
 0x25e   :  { %2899 = vmatpush3.bf16.msra.mxu1 %v3343_v4 }
 0x25f   :  { %2900 = vmatprep.subr.bf16.mxu1 %v3344_v5 }
 0x262   :  { %2901 = vmatpush3.bf16.msra.mxu1 %v3345_v60 }
 0x263   :  { %2902 = vmatprep.subr.bf16.mxu1 %v3346_v6  ;;  %v2832_v6 = vld [vmem:[%s3595_s8] ss:$0 sm:$0xff] }
 0x266   :  { %2903 = vmatpush3.bf16.msra.mxu1 %v3347_v7 }
 0x267   :  { %2904 = vmatprep.subr.bf16.mxu1 %v3348_v8 }
 0x26a   :  { %2905 = vmatpush3.bf16.msra.mxu1 %v3349_v9 }
 0x26b   :  { %2906 = vmatprep.subr.bf16.mxu1 %v3350_v10 }
 0x26e   :  { %2907 = vmatpush3.bf16.msra.mxu1 %v3351_v11 }
 0x26f   :  { %2908 = vmatprep.subr.bf16.mxu1 %v3352_v12 }
 0x272   :  { %2909 = vmatpush3.bf16.msra.mxu1 %v3353_v13 }
 0x273   :  { %2910 = vmatprep.subr.bf16.mxu1 %v3354_v14 }
 0x276   :  { %2911 = vmatpush3.bf16.msra.mxu1 %v3355_v17 }
 0x299   :  { %v2057_v20 = vpop.f32.mrf.mxu0 }
 0x29a   :  { %v2058_v30 = vadd.f32 %v2057_v20, %v1366_v25 }
 0x29b   :  { %v2059_v21 = vpop.f32.mrf.mxu0 }
 0x29c   :  { %v2060_v32 = vadd.f32 %v2059_v21, %v1370_v27 }
 0x29d   :  { %v2061_v24 = vpop.f32.mrf.mxu0 }
 0x29e   :  { %v2062_v29 = vadd.f32 %v2061_v24, %v1366_v25 }
 0x29f   :  { %v2063_v28 = vpop.f32.mrf.mxu0 }
 0x2a0   :  { %v2064_v33 = vadd.f32 %v2063_v28, %v1370_v27 }
 0x2d9   :  { %v2100_v26 = vpop.f32.mrf.mxu1  ;;  %v2143_v18 = vpop.f32.mrf.mxu0 }
 0x2da   :  { %v2101_v35 = vadd.f32 %v2100_v26, %v2058_v30  ;;  %v2144_v52 = vadd.f32 %v2143_v18, %v1374_v44 }
 0x2db   :  { %v2102_v22 = vpop.f32.mrf.mxu1  ;;  %v2145_v42 = vpop.f32.mrf.mxu0 }
 0x2dc   :  { %v2103_v37 = vadd.f32 %v2102_v22, %v2060_v32  ;;  %v2146_v54 = vadd.f32 %v2145_v42, %v1378_v46 }
 0x2dd   :  { %v2104_v31 = vpop.f32.mrf.mxu1  ;;  %v2147_v43 = vpop.f32.mrf.mxu0 }
 0x2de   :  { %v2105_v34 = vadd.f32 %v2104_v31, %v2062_v29  ;;  %v2148_v51 = vadd.f32 %v2147_v43, %v1374_v44 }
 0x2df   :  { %v2106_v36 = vpop.f32.mrf.mxu1  ;;  %v2149_v47 = vpop.f32.mrf.mxu0 }
 0x2e0   :  { %v2107_v38 = vadd.f32 %v2106_v36, %v2064_v33  ;;  %v2195_v39 = vpack.c.bf16 %v2105_v34, %v2101_v35  ;;  %v2150_v55 = vadd.f32 %v2149_v47, %v1378_v46 }
 0x2e2   :  { %v2196_v40 = vpack.c.bf16 %v2107_v38, %v2103_v37  ;;  %v2199_v15 = vmax.bf16 %v3450_v0, %v2195_v39 }
 0x2e4   :  { %v2200_v41 = vmax.bf16 %v3450_v0, %v2196_v40 }
 0x2e6   :  { %2498 = vmatprep.mubr.bf16.mxu0 %v2200_v41 }
 0x2e7   :  { %2499 = vmatmul.mubr.bf16.vlgmr.msra.gmra.mxu0 %v2199_v15 }
 0x319   :  { %v2186_v45 = vpop.f32.mrf.mxu1 }
 0x31a   :  { %v2187_v57 = vadd.f32 %v2186_v45, %v2144_v52 }
 0x31b   :  { %v2188_v50 = vpop.f32.mrf.mxu1 }
 0x31c   :  { %v2189_v59 = vadd.f32 %v2188_v50, %v2146_v54 }
 0x31d   :  { %v2190_v53 = vpop.f32.mrf.mxu1 }
 0x31e   :  { %v2191_v56 = vadd.f32 %v2190_v53, %v2148_v51 }
 0x31f   :  { %v2192_v58 = vpop.f32.mrf.mxu1 }
 0x320   :  { %v2193_v61 = vadd.f32 %v2192_v58, %v2150_v55  ;;  %v2197_v62 = vpack.c.bf16 %v2191_v56, %v2187_v57 }
 0x322   :  { %v2198_v63 = vpack.c.bf16 %v2193_v61, %v2189_v59  ;;  %v2201_v16 = vmax.bf16 %v3450_v0, %v2197_v62 }
 0x324   :  { %v2202_v1 = vmax.bf16 %v3450_v0, %v2198_v63 }
 0x326   :  { %2539 = vmatprep.mubr.bf16.mxu1 %v2202_v1 }
 0x327   :  { %2540 = vmatmul.mubr.bf16.vlgmr.msra.gmra.mxu1 %v2201_v16 }
 0x3a7   :  { %v2890_v19 = vpop.f32.mrf.mxu0 }
 0x3a9   :  { %v2891_v48 = vpop.f32.mrf.mxu0 }
 0x3aa   :  { %v2892_v5 = vadd.f32 %v2891_v48, %v2890_v19 }
 0x3ab   :  { %v2893_v49 = vpop.f32.mrf.mxu0 }
 0x3ac   :  { %v2501_v10 = vadd.f32 %v2892_v5, %v2832_v6 }
 0x3ad   :  { %v2894_v2 = vpop.f32.mrf.mxu0 }
 0x3ae   :  { %v2895_v60 = vadd.f32 %v2894_v2, %v2893_v49 }
 0x3b0   :  { %v2504_v11 = vadd.f32 %v2895_v60, %v2832_v6 }
 0x3e7   :  { %v2912_v3 = vpop.f32.mrf.mxu1 }
 0x3e9   :  { %v2913_v4 = vpop.f32.mrf.mxu1 }
 0x3ea   :  { %v2914_v8 = vadd.f32 %v2913_v4, %v2912_v3 }
 0x3eb   :  { %v2915_v7 = vpop.f32.mrf.mxu1 }
 0x3ec   :  { %v2542_v12 = vadd.f32 %v2914_v8, %v2501_v10 }
 0x3ed   :  { %v2916_v9 = vpop.f32.mrf.mxu1 }
 0x3ee   :  { %v2917_v0 = vadd.f32 %v2916_v9, %v2915_v7 }
 0x3f0   :  { %v2545_v13 = vadd.f32 %v2917_v0, %v2504_v11 }
 0x3f2   :  { %v2872_v14 = vpack.c.bf16 %v2545_v13, %v2542_v12 }
 0x3f4   :  { %2873 = vst [vmem:[%s3596_s9] sm:$0xff] %v2872_v14  }
 0x3f5   :  { %2562 = vsyncpa [#allocation3], 1 }
 0x3f6   :  { %2563 = vsyncpa [#allocation5], 1 }
 0x3f7   :  { %2564 = vsyncpa [#allocation8], 1 }

</bundles_post_ra>
